<compile_context>
chip_gen: v7x
topology: tpu7x:2x2x1
jax: 0.10.0
libtpu: 0.0.40
codegen_flags: <defaults>
</compile_context>

<pallas_src>
import jax
import jax.numpy as jnp
from jax.experimental import pallas as pl
from jax.experimental.pallas import tpu as pltpu


def _pad1_hw(x):
    """(H, W, C) -> (H+2, W+2, C) with a zero 1-pixel halo (value-level concat)."""
    H, W, C = x.shape
    zrow = jnp.zeros((1, W, C), x.dtype)
    zcol = jnp.zeros((H + 2, 1, C), x.dtype)
    xp = jnp.concatenate([zrow, x, zrow], axis=0)          # (H+2, W,   C)
    return jnp.concatenate([zcol, xp, zcol], axis=1)       # (H+2, W+2, C)


def _conv3x3_same(xpad, w, H, W):
    """3x3 'SAME' conv as 9 shifted-window matmuls with f32 accumulation.

    xpad: (H+2, W+2, Cin) bf16, zero halo already in place
    w   : (9, Cin, Cout)  bf16, tap order kh*3 + kw
    returns (H*W, Cout) f32
    """
    Cin = xpad.shape[-1]
    # Only the 3 kw shifts move data along the sublane dim; the kh shifts are
    # leading-dim row slices of the flattened slab (free views when W % 8 == 0,
    # which holds for the shapes exercised here).
    slabs = [xpad[:, kw:kw + W, :].reshape((H + 2) * W, Cin) for kw in range(3)]
    acc = None
    for kh in range(3):
        for kw in range(3):
            win = slabs[kw][kh * W:kh * W + H * W, :]            # (H*W, Cin)
            part = jax.lax.dot_general(
                win, w[kh * 3 + kw],
                dimension_numbers=(((1,), (0,)), ((), ())),
                preferred_element_type=jnp.float32)              # (H*W, Cout) f32
            acc = part if acc is None else acc + part
    return acc


def basic_block_kernel(x_ref, w1_ref, b1_ref, w2_ref, b2_ref, o_ref):
    """Fused conv3x3 -> BN bias -> ReLU -> conv3x3 -> BN bias -> +identity -> ReLU.

    x_ref  : (1, H, W, Cin) f32   unpadded input block (one image)
    w1_ref : (9, Cin,  Cout) bf16 conv1 weight, BN1 scale folded in
    w2_ref : (9, Cout, Cout) bf16 conv2 weight, BN2 scale folded in
    b1_ref, b2_ref : (1, Cout) f32 folded BN biases
    o_ref  : (1, H, W, Cout)
    """
    _, H, W, Cin = x_ref.shape
    Cout = o_ref.shape[-1]

    x = x_ref[0]                                   # (H, W, Cin) f32, aligned
    xb = x.astype(jnp.bfloat16)                    # cast before any halo copies

    # ---- conv1 (BN1 scale folded into w1) -> bias -> ReLU ----
    acc1 = _conv3x3_same(_pad1_hw(xb), w1_ref[...], H, W)        # (H*W, Cout) f32
    h = jnp.maximum(acc1 + b1_ref[...], 0.0)
    hb = h.astype(jnp.bfloat16).reshape(H, W, Cout)              # bf16 before halo

    # ---- conv2 (BN2 scale folded into w2) -> bias -> +identity -> ReLU ----
    acc2 = _conv3x3_same(_pad1_hw(hb), w2_ref[...], H, W)        # (H*W, Cout) f32
    identity = x.reshape(H * W, Cin)                             # full aligned block, f32
    out = jnp.maximum(acc2 + b2_ref[...] + identity, 0.0)
    o_ref[...] = out.reshape(1, H, W, Cout).astype(o_ref.dtype)


def fold_bn(w_hwio, gamma, beta, mean, var, eps):
    """Fold eval-mode BN into the preceding conv: returns (scaled weight, bias)."""
    s = gamma / jnp.sqrt(var + eps)
    return w_hwio * s.reshape(1, 1, 1, -1), beta - mean * s


def basic_block_forward_nhwc(x_nhwc, w1_hwio, w2_hwio,
                             g1, be1, rm1, rv1, g2, be2, rm2, rv2, eps=1e-5):
    """NHWC in/out (preferred for chaining blocks); conv weights HWIO (3,3,Cin,Cout)."""
    x = x_nhwc.astype(jnp.float32)
    N, H, W, Cin = x.shape
    Cout = w1_hwio.shape[-1]
    assert Cin == Cout == w2_hwio.shape[-1], \
        "identity path requires Cin == Cout (stride=1, no downsample)"

    # Fold BN scales into the conv weights; only biases remain for the kernel.
    w1f, b1 = fold_bn(w1_hwio, g1, be1, rm1, rv1, eps)
    w2f, b2 = fold_bn(w2_hwio, g2, be2, rm2, rv2, eps)

    # (3,3,Cin,Cout) -> (9, Cin, Cout), tap order kh*3 + kw; bf16 MXU operands.
    w1_t = w1f.reshape(9, Cin, Cout).astype(jnp.bfloat16)
    w2_t = w2f.reshape(9, Cout, Cout).astype(jnp.bfloat16)
    b1 = b1.reshape(1, Cout).astype(jnp.float32)
    b2 = b2.reshape(1, Cout).astype(jnp.float32)

    flops = 2 * N * H * W * 9 * (Cin * Cout + Cout * Cout)
    bytes_accessed = (4 * (x.size + N * H * W * Cout)
                      + 2 * (w1_t.size + w2_t.size) + 4 * (b1.size + b2.size))

    # VMEM sizing: double-buffered in/out blocks + weights + in-kernel working
    # set (bf16 halos / shifted slabs / f32 accumulators), with headroom.
    block_bytes = H * W * (Cin + Cout) * 4
    work_bytes = 8 * H * W * max(Cin, Cout) * 4
    vmem_limit = int(min(96 * 1024 * 1024,
                         max(32 * 1024 * 1024,
                             2 * block_bytes + work_bytes + (1 << 20))))

    return pl.pallas_call(
        basic_block_kernel,
        out_shape=jax.ShapeDtypeStruct((N, H, W, Cout), jnp.float32),
        grid=(N,),
        in_specs=[
            pl.BlockSpec((1, H, W, Cin), lambda n: (n, 0, 0, 0)),
            pl.BlockSpec((9, Cin, Cout), lambda n: (0, 0, 0)),
            pl.BlockSpec((1, Cout), lambda n: (0, 0)),
            pl.BlockSpec((9, Cout, Cout), lambda n: (0, 0, 0)),
            pl.BlockSpec((1, Cout), lambda n: (0, 0)),
        ],
        out_specs=pl.BlockSpec((1, H, W, Cout), lambda n: (n, 0, 0, 0)),
        compiler_params=pltpu.CompilerParams(
            dimension_semantics=("parallel",),
            vmem_limit_bytes=vmem_limit),
        cost_estimate=pl.CostEstimate(flops=flops, transcendentals=0,
                                      bytes_accessed=bytes_accessed),
    )(x, w1_t, b1, w2_t, b2)


def basic_block_forward(x_nchw, w1_hwio, w2_hwio,
                        g1, be1, rm1, rv1, g2, be2, rm2, rv2, eps=1e-5):
    """NCHW wrapper matching the PyTorch module interface.  Chained blocks
    should call basic_block_forward_nhwc directly and convert layouts only at
    model boundaries (each transpose is a full extra HBM pass)."""
    x = jnp.transpose(x_nchw, (0, 2, 3, 1))                       # NHWC
    out = basic_block_forward_nhwc(x, w1_hwio, w2_hwio,
                                   g1, be1, rm1, rv1, g2, be2, rm2, rv2, eps)
    return jnp.transpose(out, (0, 3, 1, 2))                       # back to NCHW


def reference_matched(x_nchw, w1_hwio, w2_hwio,
                      g1, be1, rm1, rv1, g2, be2, rm2, rv2, eps=1e-5):
    """Same math as the kernel (BN folded, bf16 MXU operands, f32 accumulation)
    via XLA convs — tight numerical check."""
    x = jnp.transpose(x_nchw, (0, 2, 3, 1)).astype(jnp.float32)
    w1f, b1 = fold_bn(w1_hwio, g1, be1, rm1, rv1, eps)
    w2f, b2 = fold_bn(w2_hwio, g2, be2, rm2, rv2, eps)
    dn = jax.lax.conv_dimension_numbers(x.shape, w1f.shape, ('NHWC', 'HWIO', 'NHWC'))
    h = jax.lax.conv_general_dilated(
        x.astype(jnp.bfloat16), w1f.astype(jnp.bfloat16), (1, 1), 'SAME',
        dimension_numbers=dn, preferred_element_type=jnp.float32)
    h = jnp.maximum(h + b1, 0.0)
    out = jax.lax.conv_general_dilated(
        h.astype(jnp.bfloat16), w2f.astype(jnp.bfloat16), (1, 1), 'SAME',
        dimension_numbers=dn, preferred_element_type=jnp.float32)
    out = jnp.maximum(out + b2 + x, 0.0)
    return jnp.transpose(out, (0, 3, 1, 2))


def reference_f32(x_nchw, w1_hwio, w2_hwio,
                  g1, be1, rm1, rv1, g2, be2, rm2, rv2, eps=1e-5):
    """Pure-f32 eval-mode BasicBlock (mirrors the PyTorch module)."""
    x = jnp.transpose(x_nchw, (0, 2, 3, 1)).astype(jnp.float32)
    dn = jax.lax.conv_dimension_numbers(x.shape, w1_hwio.shape, ('NHWC', 'HWIO', 'NHWC'))
    out = jax.lax.conv_general_dilated(x, w1_hwio, (1, 1), 'SAME', dimension_numbers=dn)
    out = (out - rm1) / jnp.sqrt(rv1 + eps) * g1 + be1
    out = jnp.maximum(out, 0.0)
    out = jax.lax.conv_general_dilated(out, w2_hwio, (1, 1), 'SAME', dimension_numbers=dn)
    out = (out - rm2) / jnp.sqrt(rv2 + eps) * g2 + be2
    out = jnp.maximum(out + x, 0.0)
    return jnp.transpose(out, (0, 3, 1, 2))


if __name__ == "__main__":
    # Small shapes consistent with BasicBlock(inplanes=4, planes=4, stride=1).
    N, C, H, W = 2, 4, 16, 16
    key = jax.random.PRNGKey(0)
    kx, kw1, kw2, kg1, kb1, km1, kv1, kg2, kb2, km2, kv2 = jax.random.split(key, 11)

    x = jax.random.normal(kx, (N, C, H, W), jnp.float32)

    # Conv weights in HWIO (3,3,Cin,Cout); BN params (gamma, beta, mean, var).
    w1 = jax.random.normal(kw1, (3, 3, C, C), jnp.float32) * 0.1
    w2 = jax.random.normal(kw2, (3, 3, C, C), jnp.float32) * 0.1
    g1 = 1.0 + 0.1 * jax.random.normal(kg1, (C,), jnp.float32)
    be1 = 0.1 * jax.random.normal(kb1, (C,), jnp.float32)
    rm1 = 0.1 * jax.random.normal(km1, (C,), jnp.float32)
    rv1 = 1.0 + 0.1 * jax.nn.softplus(jax.random.normal(kv1, (C,), jnp.float32))
    g2 = 1.0 + 0.1 * jax.random.normal(kg2, (C,), jnp.float32)
    be2 = 0.1 * jax.random.normal(kb2, (C,), jnp.float32)
    rm2 = 0.1 * jax.random.normal(km2, (C,), jnp.float32)
    rv2 = 1.0 + 0.1 * jax.nn.softplus(jax.random.normal(kv2, (C,), jnp.float32))

    args = (x, w1, w2, g1, be1, rm1, rv1, g2, be2, rm2, rv2)

    out = basic_block_forward(*args)
    out = jax.block_until_ready(out)
    assert out.shape == (N, C, H, W)

    # Tight check vs. a reference computed with the same bf16 MXU operands.
    ref_m = reference_matched(*args)
    assert jnp.allclose(out, ref_m, atol=1e-2, rtol=1e-2), "mismatch vs matched reference"

    # Loose sanity check vs. the pure-f32 PyTorch-equivalent (bf16 operand
    # quantization of the MXU inputs is the only deliberate deviation).
    ref_f = reference_f32(*args)
    assert jnp.allclose(out, ref_f, atol=5e-2, rtol=5e-2), "mismatch vs f32 reference"

    print("KERNEL_OK")
</pallas_src>

<mosaic_0001>
module attributes {stable_mosaic.version = 11 : i64} {
  func.func @basic_block_kernel(%arg0: i32, %arg1: memref<1x16x16x4xf32, #tpu.memory_space<vmem>>, %arg2: memref<9x4x4xbf16, #tpu.memory_space<vmem>>, %arg3: memref<1x4xf32, #tpu.memory_space<vmem>>, %arg4: memref<9x4x4xbf16, #tpu.memory_space<vmem>>, %arg5: memref<1x4xf32, #tpu.memory_space<vmem>>, %arg6: memref<1x16x16x4xf32, #tpu.memory_space<vmem>>) attributes {dimension_semantics = [#tpu.dimension_semantics<parallel>], iteration_bounds = array<i64: 2>, scalar_prefetch = 0 : i64, scratch_operands = 0 : i64, tpu.core_type = #tpu.core_type<tc>, window_params = [{transform_indices = @transform_0, window_bounds = array<i64: 1, 16, 16, 4>}, {pipeline_mode = #tpu.pipeline_mode<synchronous>, transform_indices = @transform_1, window_bounds = array<i64: 9, 4, 4>}, {pipeline_mode = #tpu.pipeline_mode<synchronous>, transform_indices = @transform_2, window_bounds = array<i64: 1, 4>}, {pipeline_mode = #tpu.pipeline_mode<synchronous>, transform_indices = @transform_3, window_bounds = array<i64: 9, 4, 4>}, {pipeline_mode = #tpu.pipeline_mode<synchronous>, transform_indices = @transform_4, window_bounds = array<i64: 1, 4>}, {transform_indices = @transform_5, window_bounds = array<i64: 1, 16, 16, 4>}]} {
    %c0 = arith.constant 0 : index
    %c0_0 = arith.constant 0 : index
    %c0_1 = arith.constant 0 : index
    %c0_2 = arith.constant 0 : index
    %0 = vector.load %arg1[%c0, %c0_0, %c0_1, %c0_2] : memref<1x16x16x4xf32, #tpu.memory_space<vmem>>, vector<1x16x16x4xf32>
    %1 = vector.shape_cast %0 : vector<1x16x16x4xf32> to vector<16x16x4xf32>
    %2 = arith.truncf %1 : vector<16x16x4xf32> to vector<16x16x4xbf16>
    %cst = arith.constant 0.000000e+00 : bf16
    %3 = vector.broadcast %cst : bf16 to vector<1x16x4xbf16>
    %cst_3 = arith.constant 0.000000e+00 : bf16
    %4 = vector.broadcast %cst_3 : bf16 to vector<18x1x4xbf16>
    %5 = tpu.concatenate %3, %2, %3 in 0 : vector<1x16x4xbf16>, vector<16x16x4xbf16>, vector<1x16x4xbf16> -> vector<18x16x4xbf16>
    %6 = tpu.concatenate %4, %5, %4 in 1 : vector<18x1x4xbf16>, vector<18x16x4xbf16>, vector<18x1x4xbf16> -> vector<18x18x4xbf16>
    %c0_4 = arith.constant 0 : index
    %c0_5 = arith.constant 0 : index
    %c0_6 = arith.constant 0 : index
    %7 = vector.load %arg2[%c0_4, %c0_5, %c0_6] : memref<9x4x4xbf16, #tpu.memory_space<vmem>>, vector<9x4x4xbf16>
    %8 = vector.extract_strided_slice %6 {offsets = [0, 0, 0], sizes = [18, 16, 4], strides = [1, 1, 1]} : vector<18x18x4xbf16> to vector<18x16x4xbf16>
    %9 = vector.shape_cast %8 : vector<18x16x4xbf16> to vector<288x4xbf16>
    %10 = vector.extract_strided_slice %6 {offsets = [0, 1, 0], sizes = [18, 16, 4], strides = [1, 1, 1]} : vector<18x18x4xbf16> to vector<18x16x4xbf16>
    %11 = vector.shape_cast %10 : vector<18x16x4xbf16> to vector<288x4xbf16>
    %12 = vector.extract_strided_slice %6 {offsets = [0, 2, 0], sizes = [18, 16, 4], strides = [1, 1, 1]} : vector<18x18x4xbf16> to vector<18x16x4xbf16>
    %13 = vector.shape_cast %12 : vector<18x16x4xbf16> to vector<288x4xbf16>
    %14 = vector.extract_strided_slice %9 {offsets = [0, 0], sizes = [256, 4], strides = [1, 1]} : vector<288x4xbf16> to vector<256x4xbf16>
    %15 = vector.extract_strided_slice %7 {offsets = [0, 0, 0], sizes = [1, 4, 4], strides = [1, 1, 1]} : vector<9x4x4xbf16> to vector<1x4x4xbf16>
    %16 = vector.shape_cast %15 : vector<1x4x4xbf16> to vector<4x4xbf16>
    %cst_7 = arith.constant dense<0.000000e+00> : vector<256x4xf32>
    %17 = tpu.matmul %14, %16, %cst_7 {dimension_numbers = #tpu.dot_dimension_numbers<[1], [0], [0], [1], [0, 0, 1, 1], [], []>} : vector<256x4xbf16>, vector<4x4xbf16>, vector<256x4xf32> -> vector<256x4xf32>
    %18 = vector.extract_strided_slice %11 {offsets = [0, 0], sizes = [256, 4], strides = [1, 1]} : vector<288x4xbf16> to vector<256x4xbf16>
    %19 = vector.extract_strided_slice %7 {offsets = [1, 0, 0], sizes = [1, 4, 4], strides = [1, 1, 1]} : vector<9x4x4xbf16> to vector<1x4x4xbf16>
    %20 = vector.shape_cast %19 : vector<1x4x4xbf16> to vector<4x4xbf16>
    %cst_8 = arith.constant dense<0.000000e+00> : vector<256x4xf32>
    %21 = tpu.matmul %18, %20, %cst_8 {dimension_numbers = #tpu.dot_dimension_numbers<[1], [0], [0], [1], [0, 0, 1, 1], [], []>} : vector<256x4xbf16>, vector<4x4xbf16>, vector<256x4xf32> -> vector<256x4xf32>
    %22 = arith.addf %17, %21 : vector<256x4xf32>
    %23 = vector.extract_strided_slice %13 {offsets = [0, 0], sizes = [256, 4], strides = [1, 1]} : vector<288x4xbf16> to vector<256x4xbf16>
    %24 = vector.extract_strided_slice %7 {offsets = [2, 0, 0], sizes = [1, 4, 4], strides = [1, 1, 1]} : vector<9x4x4xbf16> to vector<1x4x4xbf16>
    %25 = vector.shape_cast %24 : vector<1x4x4xbf16> to vector<4x4xbf16>
    %cst_9 = arith.constant dense<0.000000e+00> : vector<256x4xf32>
    %26 = tpu.matmul %23, %25, %cst_9 {dimension_numbers = #tpu.dot_dimension_numbers<[1], [0], [0], [1], [0, 0, 1, 1], [], []>} : vector<256x4xbf16>, vector<4x4xbf16>, vector<256x4xf32> -> vector<256x4xf32>
    %27 = arith.addf %22, %26 : vector<256x4xf32>
    %28 = vector.extract_strided_slice %9 {offsets = [16, 0], sizes = [256, 4], strides = [1, 1]} : vector<288x4xbf16> to vector<256x4xbf16>
    %29 = vector.extract_strided_slice %7 {offsets = [3, 0, 0], sizes = [1, 4, 4], strides = [1, 1, 1]} : vector<9x4x4xbf16> to vector<1x4x4xbf16>
    %30 = vector.shape_cast %29 : vector<1x4x4xbf16> to vector<4x4xbf16>
    %cst_10 = arith.constant dense<0.000000e+00> : vector<256x4xf32>
    %31 = tpu.matmul %28, %30, %cst_10 {dimension_numbers = #tpu.dot_dimension_numbers<[1], [0], [0], [1], [0, 0, 1, 1], [], []>} : vector<256x4xbf16>, vector<4x4xbf16>, vector<256x4xf32> -> vector<256x4xf32>
    %32 = arith.addf %27, %31 : vector<256x4xf32>
    %33 = vector.extract_strided_slice %11 {offsets = [16, 0], sizes = [256, 4], strides = [1, 1]} : vector<288x4xbf16> to vector<256x4xbf16>
    %34 = vector.extract_strided_slice %7 {offsets = [4, 0, 0], sizes = [1, 4, 4], strides = [1, 1, 1]} : vector<9x4x4xbf16> to vector<1x4x4xbf16>
    %35 = vector.shape_cast %34 : vector<1x4x4xbf16> to vector<4x4xbf16>
    %cst_11 = arith.constant dense<0.000000e+00> : vector<256x4xf32>
    %36 = tpu.matmul %33, %35, %cst_11 {dimension_numbers = #tpu.dot_dimension_numbers<[1], [0], [0], [1], [0, 0, 1, 1], [], []>} : vector<256x4xbf16>, vector<4x4xbf16>, vector<256x4xf32> -> vector<256x4xf32>
    %37 = arith.addf %32, %36 : vector<256x4xf32>
    %38 = vector.extract_strided_slice %13 {offsets = [16, 0], sizes = [256, 4], strides = [1, 1]} : vector<288x4xbf16> to vector<256x4xbf16>
    %39 = vector.extract_strided_slice %7 {offsets = [5, 0, 0], sizes = [1, 4, 4], strides = [1, 1, 1]} : vector<9x4x4xbf16> to vector<1x4x4xbf16>
    %40 = vector.shape_cast %39 : vector<1x4x4xbf16> to vector<4x4xbf16>
    %cst_12 = arith.constant dense<0.000000e+00> : vector<256x4xf32>
    %41 = tpu.matmul %38, %40, %cst_12 {dimension_numbers = #tpu.dot_dimension_numbers<[1], [0], [0], [1], [0, 0, 1, 1], [], []>} : vector<256x4xbf16>, vector<4x4xbf16>, vector<256x4xf32> -> vector<256x4xf32>
    %42 = arith.addf %37, %41 : vector<256x4xf32>
    %43 = vector.extract_strided_slice %9 {offsets = [32, 0], sizes = [256, 4], strides = [1, 1]} : vector<288x4xbf16> to vector<256x4xbf16>
    %44 = vector.extract_strided_slice %7 {offsets = [6, 0, 0], sizes = [1, 4, 4], strides = [1, 1, 1]} : vector<9x4x4xbf16> to vector<1x4x4xbf16>
    %45 = vector.shape_cast %44 : vector<1x4x4xbf16> to vector<4x4xbf16>
    %cst_13 = arith.constant dense<0.000000e+00> : vector<256x4xf32>
    %46 = tpu.matmul %43, %45, %cst_13 {dimension_numbers = #tpu.dot_dimension_numbers<[1], [0], [0], [1], [0, 0, 1, 1], [], []>} : vector<256x4xbf16>, vector<4x4xbf16>, vector<256x4xf32> -> vector<256x4xf32>
    %47 = arith.addf %42, %46 : vector<256x4xf32>
    %48 = vector.extract_strided_slice %11 {offsets = [32, 0], sizes = [256, 4], strides = [1, 1]} : vector<288x4xbf16> to vector<256x4xbf16>
    %49 = vector.extract_strided_slice %7 {offsets = [7, 0, 0], sizes = [1, 4, 4], strides = [1, 1, 1]} : vector<9x4x4xbf16> to vector<1x4x4xbf16>
    %50 = vector.shape_cast %49 : vector<1x4x4xbf16> to vector<4x4xbf16>
    %cst_14 = arith.constant dense<0.000000e+00> : vector<256x4xf32>
    %51 = tpu.matmul %48, %50, %cst_14 {dimension_numbers = #tpu.dot_dimension_numbers<[1], [0], [0], [1], [0, 0, 1, 1], [], []>} : vector<256x4xbf16>, vector<4x4xbf16>, vector<256x4xf32> -> vector<256x4xf32>
    %52 = arith.addf %47, %51 : vector<256x4xf32>
    %53 = vector.extract_strided_slice %13 {offsets = [32, 0], sizes = [256, 4], strides = [1, 1]} : vector<288x4xbf16> to vector<256x4xbf16>
    %54 = vector.extract_strided_slice %7 {offsets = [8, 0, 0], sizes = [1, 4, 4], strides = [1, 1, 1]} : vector<9x4x4xbf16> to vector<1x4x4xbf16>
    %55 = vector.shape_cast %54 : vector<1x4x4xbf16> to vector<4x4xbf16>
    %cst_15 = arith.constant dense<0.000000e+00> : vector<256x4xf32>
    %56 = tpu.matmul %53, %55, %cst_15 {dimension_numbers = #tpu.dot_dimension_numbers<[1], [0], [0], [1], [0, 0, 1, 1], [], []>} : vector<256x4xbf16>, vector<4x4xbf16>, vector<256x4xf32> -> vector<256x4xf32>
    %57 = arith.addf %52, %56 : vector<256x4xf32>
    %c0_16 = arith.constant 0 : index
    %c0_17 = arith.constant 0 : index
    %58 = vector.load %arg3[%c0_16, %c0_17] : memref<1x4xf32, #tpu.memory_space<vmem>>, vector<1x4xf32>
    %59 = vector.broadcast %58 : vector<1x4xf32> to vector<256x4xf32>
    %60 = arith.addf %57, %59 : vector<256x4xf32>
    %cst_18 = arith.constant 0.000000e+00 : f32
    %61 = vector.broadcast %cst_18 : f32 to vector<256x4xf32>
    %62 = arith.maximumf %60, %61 : vector<256x4xf32>
    %63 = arith.truncf %62 : vector<256x4xf32> to vector<256x4xbf16>
    %64 = vector.shape_cast %63 : vector<256x4xbf16> to vector<16x16x4xbf16>
    %cst_19 = arith.constant 0.000000e+00 : bf16
    %65 = vector.broadcast %cst_19 : bf16 to vector<1x16x4xbf16>
    %cst_20 = arith.constant 0.000000e+00 : bf16
    %66 = vector.broadcast %cst_20 : bf16 to vector<18x1x4xbf16>
    %67 = tpu.concatenate %65, %64, %65 in 0 : vector<1x16x4xbf16>, vector<16x16x4xbf16>, vector<1x16x4xbf16> -> vector<18x16x4xbf16>
    %68 = tpu.concatenate %66, %67, %66 in 1 : vector<18x1x4xbf16>, vector<18x16x4xbf16>, vector<18x1x4xbf16> -> vector<18x18x4xbf16>
    %c0_21 = arith.constant 0 : index
    %c0_22 = arith.constant 0 : index
    %c0_23 = arith.constant 0 : index
    %69 = vector.load %arg4[%c0_21, %c0_22, %c0_23] : memref<9x4x4xbf16, #tpu.memory_space<vmem>>, vector<9x4x4xbf16>
    %70 = vector.extract_strided_slice %68 {offsets = [0, 0, 0], sizes = [18, 16, 4], strides = [1, 1, 1]} : vector<18x18x4xbf16> to vector<18x16x4xbf16>
    %71 = vector.shape_cast %70 : vector<18x16x4xbf16> to vector<288x4xbf16>
    %72 = vector.extract_strided_slice %68 {offsets = [0, 1, 0], sizes = [18, 16, 4], strides = [1, 1, 1]} : vector<18x18x4xbf16> to vector<18x16x4xbf16>
    %73 = vector.shape_cast %72 : vector<18x16x4xbf16> to vector<288x4xbf16>
    %74 = vector.extract_strided_slice %68 {offsets = [0, 2, 0], sizes = [18, 16, 4], strides = [1, 1, 1]} : vector<18x18x4xbf16> to vector<18x16x4xbf16>
    %75 = vector.shape_cast %74 : vector<18x16x4xbf16> to vector<288x4xbf16>
    %76 = vector.extract_strided_slice %71 {offsets = [0, 0], sizes = [256, 4], strides = [1, 1]} : vector<288x4xbf16> to vector<256x4xbf16>
    %77 = vector.extract_strided_slice %69 {offsets = [0, 0, 0], sizes = [1, 4, 4], strides = [1, 1, 1]} : vector<9x4x4xbf16> to vector<1x4x4xbf16>
    %78 = vector.shape_cast %77 : vector<1x4x4xbf16> to vector<4x4xbf16>
    %cst_24 = arith.constant dense<0.000000e+00> : vector<256x4xf32>
    %79 = tpu.matmul %76, %78, %cst_24 {dimension_numbers = #tpu.dot_dimension_numbers<[1], [0], [0], [1], [0, 0, 1, 1], [], []>} : vector<256x4xbf16>, vector<4x4xbf16>, vector<256x4xf32> -> vector<256x4xf32>
    %80 = vector.extract_strided_slice %73 {offsets = [0, 0], sizes = [256, 4], strides = [1, 1]} : vector<288x4xbf16> to vector<256x4xbf16>
    %81 = vector.extract_strided_slice %69 {offsets = [1, 0, 0], sizes = [1, 4, 4], strides = [1, 1, 1]} : vector<9x4x4xbf16> to vector<1x4x4xbf16>
    %82 = vector.shape_cast %81 : vector<1x4x4xbf16> to vector<4x4xbf16>
    %cst_25 = arith.constant dense<0.000000e+00> : vector<256x4xf32>
    %83 = tpu.matmul %80, %82, %cst_25 {dimension_numbers = #tpu.dot_dimension_numbers<[1], [0], [0], [1], [0, 0, 1, 1], [], []>} : vector<256x4xbf16>, vector<4x4xbf16>, vector<256x4xf32> -> vector<256x4xf32>
    %84 = arith.addf %79, %83 : vector<256x4xf32>
    %85 = vector.extract_strided_slice %75 {offsets = [0, 0], sizes = [256, 4], strides = [1, 1]} : vector<288x4xbf16> to vector<256x4xbf16>
    %86 = vector.extract_strided_slice %69 {offsets = [2, 0, 0], sizes = [1, 4, 4], strides = [1, 1, 1]} : vector<9x4x4xbf16> to vector<1x4x4xbf16>
    %87 = vector.shape_cast %86 : vector<1x4x4xbf16> to vector<4x4xbf16>
    %cst_26 = arith.constant dense<0.000000e+00> : vector<256x4xf32>
    %88 = tpu.matmul %85, %87, %cst_26 {dimension_numbers = #tpu.dot_dimension_numbers<[1], [0], [0], [1], [0, 0, 1, 1], [], []>} : vector<256x4xbf16>, vector<4x4xbf16>, vector<256x4xf32> -> vector<256x4xf32>
    %89 = arith.addf %84, %88 : vector<256x4xf32>
    %90 = vector.extract_strided_slice %71 {offsets = [16, 0], sizes = [256, 4], strides = [1, 1]} : vector<288x4xbf16> to vector<256x4xbf16>
    %91 = vector.extract_strided_slice %69 {offsets = [3, 0, 0], sizes = [1, 4, 4], strides = [1, 1, 1]} : vector<9x4x4xbf16> to vector<1x4x4xbf16>
    %92 = vector.shape_cast %91 : vector<1x4x4xbf16> to vector<4x4xbf16>
    %cst_27 = arith.constant dense<0.000000e+00> : vector<256x4xf32>
    %93 = tpu.matmul %90, %92, %cst_27 {dimension_numbers = #tpu.dot_dimension_numbers<[1], [0], [0], [1], [0, 0, 1, 1], [], []>} : vector<256x4xbf16>, vector<4x4xbf16>, vector<256x4xf32> -> vector<256x4xf32>
    %94 = arith.addf %89, %93 : vector<256x4xf32>
    %95 = vector.extract_strided_slice %73 {offsets = [16, 0], sizes = [256, 4], strides = [1, 1]} : vector<288x4xbf16> to vector<256x4xbf16>
    %96 = vector.extract_strided_slice %69 {offsets = [4, 0, 0], sizes = [1, 4, 4], strides = [1, 1, 1]} : vector<9x4x4xbf16> to vector<1x4x4xbf16>
    %97 = vector.shape_cast %96 : vector<1x4x4xbf16> to vector<4x4xbf16>
    %cst_28 = arith.constant dense<0.000000e+00> : vector<256x4xf32>
    %98 = tpu.matmul %95, %97, %cst_28 {dimension_numbers = #tpu.dot_dimension_numbers<[1], [0], [0], [1], [0, 0, 1, 1], [], []>} : vector<256x4xbf16>, vector<4x4xbf16>, vector<256x4xf32> -> vector<256x4xf32>
    %99 = arith.addf %94, %98 : vector<256x4xf32>
    %100 = vector.extract_strided_slice %75 {offsets = [16, 0], sizes = [256, 4], strides = [1, 1]} : vector<288x4xbf16> to vector<256x4xbf16>
    %101 = vector.extract_strided_slice %69 {offsets = [5, 0, 0], sizes = [1, 4, 4], strides = [1, 1, 1]} : vector<9x4x4xbf16> to vector<1x4x4xbf16>
    %102 = vector.shape_cast %101 : vector<1x4x4xbf16> to vector<4x4xbf16>
    %cst_29 = arith.constant dense<0.000000e+00> : vector<256x4xf32>
    %103 = tpu.matmul %100, %102, %cst_29 {dimension_numbers = #tpu.dot_dimension_numbers<[1], [0], [0], [1], [0, 0, 1, 1], [], []>} : vector<256x4xbf16>, vector<4x4xbf16>, vector<256x4xf32> -> vector<256x4xf32>
    %104 = arith.addf %99, %103 : vector<256x4xf32>
    %105 = vector.extract_strided_slice %71 {offsets = [32, 0], sizes = [256, 4], strides = [1, 1]} : vector<288x4xbf16> to vector<256x4xbf16>
    %106 = vector.extract_strided_slice %69 {offsets = [6, 0, 0], sizes = [1, 4, 4], strides = [1, 1, 1]} : vector<9x4x4xbf16> to vector<1x4x4xbf16>
    %107 = vector.shape_cast %106 : vector<1x4x4xbf16> to vector<4x4xbf16>
    %cst_30 = arith.constant dense<0.000000e+00> : vector<256x4xf32>
    %108 = tpu.matmul %105, %107, %cst_30 {dimension_numbers = #tpu.dot_dimension_numbers<[1], [0], [0], [1], [0, 0, 1, 1], [], []>} : vector<256x4xbf16>, vector<4x4xbf16>, vector<256x4xf32> -> vector<256x4xf32>
    %109 = arith.addf %104, %108 : vector<256x4xf32>
    %110 = vector.extract_strided_slice %73 {offsets = [32, 0], sizes = [256, 4], strides = [1, 1]} : vector<288x4xbf16> to vector<256x4xbf16>
    %111 = vector.extract_strided_slice %69 {offsets = [7, 0, 0], sizes = [1, 4, 4], strides = [1, 1, 1]} : vector<9x4x4xbf16> to vector<1x4x4xbf16>
    %112 = vector.shape_cast %111 : vector<1x4x4xbf16> to vector<4x4xbf16>
    %cst_31 = arith.constant dense<0.000000e+00> : vector<256x4xf32>
    %113 = tpu.matmul %110, %112, %cst_31 {dimension_numbers = #tpu.dot_dimension_numbers<[1], [0], [0], [1], [0, 0, 1, 1], [], []>} : vector<256x4xbf16>, vector<4x4xbf16>, vector<256x4xf32> -> vector<256x4xf32>
    %114 = arith.addf %109, %113 : vector<256x4xf32>
    %115 = vector.extract_strided_slice %75 {offsets = [32, 0], sizes = [256, 4], strides = [1, 1]} : vector<288x4xbf16> to vector<256x4xbf16>
    %116 = vector.extract_strided_slice %69 {offsets = [8, 0, 0], sizes = [1, 4, 4], strides = [1, 1, 1]} : vector<9x4x4xbf16> to vector<1x4x4xbf16>
    %117 = vector.shape_cast %116 : vector<1x4x4xbf16> to vector<4x4xbf16>
    %cst_32 = arith.constant dense<0.000000e+00> : vector<256x4xf32>
    %118 = tpu.matmul %115, %117, %cst_32 {dimension_numbers = #tpu.dot_dimension_numbers<[1], [0], [0], [1], [0, 0, 1, 1], [], []>} : vector<256x4xbf16>, vector<4x4xbf16>, vector<256x4xf32> -> vector<256x4xf32>
    %119 = arith.addf %114, %118 : vector<256x4xf32>
    %120 = vector.shape_cast %1 : vector<16x16x4xf32> to vector<256x4xf32>
    %c0_33 = arith.constant 0 : index
    %c0_34 = arith.constant 0 : index
    %121 = vector.load %arg5[%c0_33, %c0_34] : memref<1x4xf32, #tpu.memory_space<vmem>>, vector<1x4xf32>
    %122 = vector.broadcast %121 : vector<1x4xf32> to vector<256x4xf32>
    %123 = arith.addf %119, %122 : vector<256x4xf32>
    %124 = arith.addf %123, %120 : vector<256x4xf32>
    %cst_35 = arith.constant 0.000000e+00 : f32
    %125 = vector.broadcast %cst_35 : f32 to vector<256x4xf32>
    %126 = arith.maximumf %124, %125 : vector<256x4xf32>
    %127 = vector.shape_cast %126 : vector<256x4xf32> to vector<1x16x16x4xf32>
    %c0_36 = arith.constant 0 : index
    %c0_37 = arith.constant 0 : index
    %c0_38 = arith.constant 0 : index
    %c0_39 = arith.constant 0 : index
    %128 = vector.load %arg6[%c0_36, %c0_37, %c0_38, %c0_39] : memref<1x16x16x4xf32, #tpu.memory_space<vmem>>, vector<1x16x16x4xf32>
    tpu.vector_store %arg6[%c0_36, %c0_37, %c0_38, %c0_39], %127 {strides = array<i32>} : memref<1x16x16x4xf32, #tpu.memory_space<vmem>>, vector<1x16x16x4xf32>,
    return
  }
  func.func @transform_0(%arg0: i32) -> (i32, i32, i32, i32) {
    %c0_i32 = arith.constant 0 : i32
    %c0_i32_0 = arith.constant 0 : i32
    %c0_i32_1 = arith.constant 0 : i32
    %c0_i32_2 = arith.constant 0 : i32
    return %arg0, %c0_i32, %c0_i32_0, %c0_i32_1 : i32, i32, i32, i32
  }
  func.func @transform_1(%arg0: i32) -> (i32, i32, i32) {
    %c0_i32 = arith.constant 0 : i32
    %c0_i32_0 = arith.constant 0 : i32
    %c0_i32_1 = arith.constant 0 : i32
    %c0_i32_2 = arith.constant 0 : i32
    return %c0_i32, %c0_i32_0, %c0_i32_1 : i32, i32, i32
  }
  func.func @transform_2(%arg0: i32) -> (i32, i32) {
    %c0_i32 = arith.constant 0 : i32
    %c0_i32_0 = arith.constant 0 : i32
    %c0_i32_1 = arith.constant 0 : i32
    return %c0_i32, %c0_i32_0 : i32, i32
  }
  func.func @transform_3(%arg0: i32) -> (i32, i32, i32) {
    %c0_i32 = arith.constant 0 : i32
    %c0_i32_0 = arith.constant 0 : i32
    %c0_i32_1 = arith.constant 0 : i32
    %c0_i32_2 = arith.constant 0 : i32
    return %c0_i32, %c0_i32_0, %c0_i32_1 : i32, i32, i32
  }
  func.func @transform_4(%arg0: i32) -> (i32, i32) {
    %c0_i32 = arith.constant 0 : i32
    %c0_i32_0 = arith.constant 0 : i32
    %c0_i32_1 = arith.constant 0 : i32
    return %c0_i32, %c0_i32_0 : i32, i32
  }
  func.func @transform_5(%arg0: i32) -> (i32, i32, i32, i32) {
    %c0_i32 = arith.constant 0 : i32
    %c0_i32_0 = arith.constant 0 : i32
    %c0_i32_1 = arith.constant 0 : i32
    %c0_i32_2 = arith.constant 0 : i32
    return %arg0, %c0_i32, %c0_i32_0, %c0_i32_1 : i32, i32, i32, i32
  }
}

</mosaic_0001>

<bundles_post_ra>
// kernel: tpu_custom_call.1
= control target key start
LH: loop header
LB: loop body
LE: loop exit
PB: predicated region body
PF: predicated region fallthrough
CT: control target
= control target key end

     0   :  { %s6995_s18 = smov 0   ;;  %s8510_s0 = inlined_call_operand.vmem [shape: f32[2,16,16,4], index: 0, kind: input, shape index: {}]   ;;  %s8511_s1 = inlined_call_operand.vmem [shape: bf16[9,4,4], index: 1, kind: input, shape index: {}]   ;;  %s8512_s2 = inlined_call_operand.vmem [shape: f32[1,4], index: 2, kind: input, shape index: {}]   ;;  %s8513_s3 = inlined_call_operand.vmem [shape: bf16[9,4,4], index: 3, kind: input, shape index: {}]   ;;  %s8514_s4 = inlined_call_operand.vmem [shape: f32[1,4], index: 4, kind: input, shape index: {}]   ;;  %s8515_s5 = inlined_call_operand.vmem [shape: f32[2,16,16,4], index: 5, kind: output, shape index: {}]  }
   0x1 LB: > { %s5164_s19 = sadd.s32 4294967295, %s6962_s18   ;;  %p5168_p0 = scmp.ge.s32.totalorder %s6962_s18, 1  ;;  %s6962_s18 = sphi %s6995_s18, %s15_s18  }
   0x2   : > { %p187_p1 = scmp.lt.s32.totalorder %s6962_s18, 3 }
   0x4   : > { %p188_p2 = pnand %p5168_p0, %p187_p1 }
   0x5   : > { %v465_v0 = vld [vmem:[%s8511_s1 + $0x2] sm:$0x3] (!%p188_p2)  ;;  %vm813_vm0 = vcmask (!%p188_p2), 1041408   ;;  %vm427_vm1 = vcmask (!%p188_p2), 1040384   ;;  %v6964_v2 = vmov (!%p188_p2), 0   ;;  %p215_p3 = scmp.lt.s32.totalorder (!%p188_p2), %s5164_s19, 1 }
   0x6   : > { %191 = sbr.rel (%p188_p2) target bundleno = 1577 (0x629), region = 40  ;;  %6897 = vmatprep.subr.msk.bf16.mxu0 (!%p188_p2), %vm813_vm0, %v465_v0  ;;  %v815_v1 = vsel (!%p188_p2), %vm813_vm0, %v465_v0, 0  ;;  %v277_v3 = vrot.slane (!%p188_p2), %v6964_v2, 7  ;;  %vm428_vm2 = vsmask.f32 (!%p188_p2), 256  ;;  %vm764_vm5 = vcmask (!%p188_p2), 31744  }
   0x7   : > { %5774 = vmatpush3.bf16.msra.mxu0 (!%p188_p2), %v815_v1  ;;  %vm7008_vm3 = vmand (!%p188_p2), %vm427_vm1, %vm428_vm2  ;;  %v464_v5 = vld [vmem:[%s8511_s1] sm:$0x3] (!%p188_p2)  ;;  %vm473_vm4 = vsmask.f32 (!%p188_p2), 7424  ;;  %vm712_vm6 = vcmask (!%p188_p2), 1046528  }
   0x8   : > { %v7017_v6 = vsel (!%p188_p2), %vm7008_vm3, 0, %v277_v3  ;;  %v7021_v7 = vsel (!%p188_p2), %vm7008_vm3, %v277_v3, 0  ;;  %6898 = vmatprep.subr.msk.bf16.mxu0 (!%p188_p2), %vm813_vm0, %v464_v5  ;;  %v1011_v38 = vsel (!%p188_p2), %vm813_vm0, %v464_v5, 0 }
   0x9   : > { %v475_v8 = vshrl.u32 (!%p188_p2), %v7017_v6, 16  ;;  %v477_v9 = vshll.u32 (!%p188_p2), %v7017_v6, 16  ;;  %v482_v10 = vshll.u32 (!%p188_p2), %v7021_v7, 16 }
   0xb   : > { %v479_v11 = vrot.slane (!%p188_p2), %v477_v9, 1  ;;  %v484_v12 = vrot.slane (!%p188_p2), %v482_v10, 1 }
   0xd   : > { %s8519_s19 = smov (!%p215_p3, %s5164_s19), 1  ;;  %v480_v13 = vor.u32 %v479_v11, %v475_v8 }
   0xe   : > { %s5465_s24 = sshll.u32 %s8519_s19, 8 }
   0xf   : > { %s7035_s27 = scalar_lea.vmem %s8510_s0, %s5465_s24  ;;  %v7044_v21 = vsel %vm473_vm4, %v480_v13, %v484_v12  ;;  %s8381_s22 = scalar_lea.vmem %s8515_s5, %s5465_s24 }
  0x10   : > { %v226_v14 = vld [vmem:[%s7035_s27] sm:$0xff]  ;;  %v227_v15 = vld [vmem:[%s7035_s27 + $0x8] sm:$0xff]  ;;  %v228_v16 = vld [vmem:[%s7035_s27 + $0x10] sm:$0xff]  ;;  %5775 = vmatprep.mubr.msk.bf16.mxu0 %vm764_vm5, %v7044_v21  ;;  %6081 = vmatprep.mubr.msk.bf16.mxu1 %vm764_vm5, %v7044_v21 }
  0x11   : > { %v258_v17 = vpack.c.bf16 %v227_v15, %v226_v14  ;;  %v229_v18 = vld [vmem:[%s7035_s27 + $0x18] sm:$0xff]  ;;  %v230_v19 = vld [vmem:[%s7035_s27 + $0x20] sm:$0xff]  ;;  %v231_v20 = vld [vmem:[%s7035_s27 + $0x28] sm:$0xff] }
  0x12   : > { %v259_v22 = vpack.c.bf16 %v229_v18, %v228_v16  ;;  %v260_v23 = vpack.c.bf16 %v231_v20, %v230_v19  ;;  %v232_v24 = vld [vmem:[%s7035_s27 + $0x30] sm:$0xff]  ;;  %v233_v25 = vld [vmem:[%s7035_s27 + $0x38] sm:$0xff]  ;;  %v234_v26 = vld [vmem:[%s7035_s27 + $0x40] sm:$0xff] }
  0x13   : > { %v282_v27 = vshrl.u32 %v258_v17, 16  ;;  %v285_v28 = vshll.u32 %v258_v17, 16  ;;  %v261_v29 = vpack.c.bf16 %v233_v25, %v232_v24  ;;  %v235_v30 = vld [vmem:[%s7035_s27 + $0x48] sm:$0xff]  ;;  %v236_v61 = vld [vmem:[%s7035_s27 + $0x50] sm:$0xff]  ;;  %v237_v62 = vld [vmem:[%s7035_s27 + $0x58] sm:$0xff] }
  0x14   : > { %v289_v31 = vshrl.u32 %v259_v22, 16  ;;  %v292_v32 = vshll.u32 %v259_v22, 16  ;;  %v296_v33 = vshrl.u32 %v260_v23, 16  ;;  %v299_v35 = vshll.u32 %v260_v23, 16  ;;  %v238_v3 = vld [vmem:[%s7035_s27 + $0x60] sm:$0xff]  ;;  %v239_v5 = vld [vmem:[%s7035_s27 + $0x68] sm:$0xff] }
  0x15   : > { %v284_v34 = vrot.slane %v282_v27, 7  ;;  %v303_v36 = vshrl.u32 %v261_v29, 16  ;;  %v262_v37 = vpack.c.bf16 %v235_v30, %v234_v26  ;;  %v306_v44 = vshll.u32 %v261_v29, 16  ;;  %v7113_v25 = vld [vmem:[%s8511_s1 + $0x4] sm:$0x3]  ;;  %v240_v30 = vld [vmem:[%s7035_s27 + $0x70] sm:$0xff] }
  0x16   : > { %v291_v39 = vrot.slane %v289_v31, 7  ;;  %v298_v40 = vrot.slane %v296_v33, 7  ;;  %v263_v15 = vpack.c.bf16 %v237_v62, %v236_v61  ;;  %v264_v19 = vpack.c.bf16 %v239_v5, %v238_v3  ;;  %v241_v31 = vld [vmem:[%s7035_s27 + $0x78] sm:$0xff] }
  0x17   : > { %v287_v41 = vor.u32 %v285_v28, %v284_v34  ;;  %v7057_v42 = vsel %vm7008_vm3, %v284_v34, 0  ;;  %v305_v43 = vrot.slane %v303_v36, 7  ;;  %v310_v48 = vshrl.u32 %v262_v37, 16  ;;  %v242_v36 = vld [vmem:[%s7035_s27 + $0x80] sm:$0xff] }
  0x18   : > { %v494_v45 = vshll.u32 %v7057_v42, 16  ;;  %v294_v46 = vor.u32 %v292_v32, %v291_v39  ;;  %v7062_v47 = vsel %vm7008_vm3, %v291_v39, 0  ;;  %v301_v51 = vor.u32 %v299_v35, %v298_v40 }
  0x19   : > { %v7066_v49 = vsel %vm7008_vm3, 0, %v287_v41  ;;  %v506_v50 = vshll.u32 %v7062_v47, 16  ;;  %v7071_v52 = vsel %vm7008_vm3, %v298_v40, 0  ;;  %v308_v9 = vor.u32 %v306_v44, %v305_v43 }
  0x1a   : > { %v487_v53 = vshrl.u32 %v7066_v49, 16  ;;  %v489_v54 = vshll.u32 %v7066_v49, 16  ;;  %v496_v55 = vrot.slane %v494_v45, 1  ;;  %v7077_v56 = vsel %vm7008_vm3, 0, %v294_v46 }
  0x1b   : > { %v499_v57 = vshrl.u32 %v7077_v56, 16  ;;  %v501_v58 = vshll.u32 %v7077_v56, 16  ;;  %v508_v59 = vrot.slane %v506_v50, 1  ;;  %v7083_v60 = vsel %vm7008_vm3, 0, %v301_v51 }
  0x1c   : > { %v491_v63 = vrot.slane %v489_v54, 1  ;;  %v511_v0 = vshrl.u32 %v7083_v60, 16  ;;  %v513_v1 = vshll.u32 %v7083_v60, 16  ;;  %v518_v2 = vshll.u32 %v7071_v52, 16  ;;  %v244_v54 = vld [vmem:[%s7035_s27 + $0x90] sm:$0xff] }
  0x1d   : > { %v503_v8 = vrot.slane %v501_v58, 1  ;;  %v7094_v10 = vsel %vm7008_vm3, %v305_v43, 0  ;;  %v312_v11 = vrot.slane %v310_v48, 7  ;;  %v7099_v17 = vsel %vm7008_vm3, 0, %v308_v9 }
  0x1e   : > { %v492_v12 = vor.u32 %v491_v63, %v487_v53  ;;  %v515_v13 = vrot.slane %v513_v1, 1  ;;  %v530_v14 = vshll.u32 %v7094_v10, 16  ;;  %v313_v18 = vshll.u32 %v262_v37, 16  ;;  %v243_v37 = vld [vmem:[%s7035_s27 + $0x88] sm:$0xff] }
  0x1f   : > { %v504_v16 = vor.u32 %v503_v8, %v499_v57  ;;  %v523_v22 = vshrl.u32 %v7099_v17, 16  ;;  %v525_v23 = vshll.u32 %v7099_v17, 16  ;;  %v7108_v24 = vsel %vm7008_vm3, %v312_v11, 0 }
  0x20   : > { %v7102_v20 = vsel %vm473_vm4, %v492_v12, %v496_v55  ;;  %v516_v27 = vor.u32 %v515_v13, %v511_v0  ;;  %v520_v28 = vrot.slane %v518_v2, 1  ;;  %v315_v29 = vor.u32 %v313_v18, %v312_v11  ;;  %v245_v55 = vld [vmem:[%s7035_s27 + $0x98] sm:$0xff] }
  0x21   : > { %5776 = vmatmul.mubr.msk.bf16.vlgmr.msra.gmra.mrb[0].mxu0 %vm764_vm5, %v7102_v20  ;;  %v7118_v26 = vsel %vm473_vm4, %v504_v16, %v508_v59  ;;  %v527_v32 = vrot.slane %v525_v23, 1  ;;  %v532_v33 = vrot.slane %v530_v14, 1  ;;  %v317_v34 = vshrl.u32 %v263_v15, 16  ;;  %v246_v14 = vld [vmem:[%s7035_s27 + $0xa0] sm:$0xff] }
  0x22   : > { %5808 = vmatpush3.bf16.msra.mxu0 %v1011_v38  ;;  %5779 = vmatprep.mubr.msk.bf16.mxu0 %vm764_vm5, %v7118_v26  ;;  %v320_v35 = vshll.u32 %v263_v15, 16  ;;  %v7128_v39 = vsel %vm7008_vm3, 0, %v315_v29  ;;  %v542_v40 = vshll.u32 %v7108_v24, 16  ;;  %v324_v41 = vshrl.u32 %v264_v19, 16  ;;  %v247_v15 = vld [vmem:[%s7035_s27 + $0xa8] sm:$0xff] }
  0x23   : > { %v327_v43 = vshll.u32 %v264_v19, 16  ;;  %6899 = vmatprep.subr.msk.bf16.mxu0 %vm813_vm0, %v7113_v25  ;;  %v528_v38 = vor.u32 %v527_v32, %v523_v22  ;;  %v535_v44 = vshrl.u32 %v7128_v39, 16  ;;  %v537_v45 = vshll.u32 %v7128_v39, 16 }
  0x24   : > { %v319_v46 = vrot.slane %v317_v34, 7  ;;  %v7136_v48 = vsel %vm473_vm4, %v516_v27, %v520_v28  ;;  %v326_v50 = vrot.slane %v324_v41, 7  ;;  %v265_v51 = vpack.c.bf16 %v241_v31, %v240_v30 }
  0x25   : > { %v266_v53 = vpack.c.bf16 %v243_v37, %v242_v36  ;;  %v7141_v57 = vsel %vm473_vm4, %v528_v38, %v532_v33  ;;  %v539_v58 = vrot.slane %v537_v45, 1  ;;  %v544_v3 = vrot.slane %v542_v40, 1 }
  0x26   : > { %v322_v59 = vor.u32 %v320_v35, %v319_v46  ;;  %v7145_v61 = vsel %vm7008_vm3, %v319_v46, 0  ;;  %v329_v63 = vor.u32 %v327_v43, %v326_v50  ;;  %v7150_v0 = vsel %vm7008_vm3, %v326_v50, 0 }
  0x27   : > { %v554_v62 = vshll.u32 %v7145_v61, 16  ;;  %v331_v1 = vshrl.u32 %v265_v51, 16  ;;  %v540_v2 = vor.u32 %v539_v58, %v535_v44  ;;  %v267_v8 = vpack.c.bf16 %v245_v55, %v244_v54 }
  0x28   : > { %v7154_v5 = vsel %vm7008_vm3, 0, %v322_v59  ;;  %v7162_v12 = vsel %vm7008_vm3, 0, %v329_v63  ;;  %v334_v13 = vshll.u32 %v265_v51, 16  ;;  %v566_v22 = vshll.u32 %v7150_v0, 16 }
  0x29   : > { %5780 = vmatmul.mubr.msk.bf16.gmra.mrb[4].mxu0 %vm764_vm5, %v7136_v48  ;;  %v547_v9 = vshrl.u32 %v7154_v5, 16  ;;  %v549_v11 = vshll.u32 %v7154_v5, 16  ;;  %v556_v16 = vrot.slane %v554_v62, 1  ;;  %v559_v18 = vshrl.u32 %v7162_v12, 16 }
  0x2a   : > { %5783 = vmatprep.mubr.msk.bf16.mxu0 %vm764_vm5, %v7141_v57  ;;  %v561_v19 = vshll.u32 %v7162_v12, 16  ;;  %v333_v27 = vrot.slane %v331_v1, 7  ;;  %v338_v28 = vshrl.u32 %v266_v53, 16  ;;  %v341_v29 = vshll.u32 %v266_v53, 16 }
  0x2b   : > { %v551_v23 = vrot.slane %v549_v11, 1  ;;  %v345_v31 = vshrl.u32 %v267_v8, 16  ;;  %v348_v32 = vshll.u32 %v267_v8, 16  ;;  %v268_v33 = vpack.c.bf16 %v247_v15, %v246_v14  ;;  %v249_v8 = vld [vmem:[%s7035_s27 + $0xb8] sm:$0xff] }
  0x2c   : > { %v563_v30 = vrot.slane %v561_v19, 1  ;;  %v336_v35 = vor.u32 %v334_v13, %v333_v27  ;;  %v7173_v36 = vsel %vm7008_vm3, %v333_v27, 0  ;;  %v340_v37 = vrot.slane %v338_v28, 7  ;;  %v250_v19 = vld [vmem:[%s7035_s27 + $0xc0] sm:$0xff] }
  0x2d   : > { %v552_v34 = vor.u32 %v551_v23, %v547_v9  ;;  %v7176_v40 = vsel %vm473_vm4, %v540_v2, %v544_v3  ;;  %v578_v41 = vshll.u32 %v7173_v36, 16  ;;  %v347_v43 = vrot.slane %v345_v31, 7  ;;  %v248_v3 = vld [vmem:[%s7035_s27 + $0xb0] sm:$0xff] }
  0x2e   : > { %v7184_v44 = vsel %vm7008_vm3, 0, %v336_v35  ;;  %v343_v45 = vor.u32 %v341_v29, %v340_v37  ;;  %v352_v46 = vshrl.u32 %v268_v33, 16  ;;  %v564_v50 = vor.u32 %v563_v30, %v559_v18 }
  0x2f   : > { %v7180_v38 = vsel %vm473_vm4, %v552_v34, %v556_v16  ;;  %v568_v51 = vrot.slane %v566_v22, 1  ;;  %v571_v53 = vshrl.u32 %v7184_v44, 16  ;;  %v573_v54 = vshll.u32 %v7184_v44, 16  ;;  %v251_v22 = vld [vmem:[%s7035_s27 + $0xc8] sm:$0xff]  ;;  %v252_v34 = vld [vmem:[%s7035_s27 + $0xd0] sm:$0xff] }
  0x30   : > { %v7192_v55 = vsel %vm7008_vm3, 0, %v343_v45  ;;  %v7196_v58 = vsel %vm7008_vm3, %v340_v37, 0  ;;  %v350_v59 = vor.u32 %v348_v32, %v347_v43  ;;  %v7200_v62 = vsel %vm7008_vm3, %v347_v43, 0  ;;  %v253_v45 = vld [vmem:[%s7035_s27 + $0xd8] sm:$0xff] }
  0x31   : > { %5784 = vmatmul.mubr.msk.bf16.gmra.mrb[8].mxu0 %vm764_vm5, %v7176_v40  ;;  %v575_v63 = vrot.slane %v573_v54, 1  ;;  %v580_v1 = vrot.slane %v578_v41, 1  ;;  %v585_v2 = vshll.u32 %v7192_v55, 16  ;;  %v354_v11 = vrot.slane %v352_v46, 7  ;;  %v254_v46 = vld [vmem:[%s7035_s27 + $0xe0] sm:$0xff] }
  0x32   : > { %5787 = vmatprep.mubr.msk.bf16.mxu0 %vm764_vm5, %v7180_v38  ;;  %v7209_v9 = vsel %vm7008_vm3, 0, %v350_v59  ;;  %v355_v13 = vshll.u32 %v268_v33, 16  ;;  %v590_v15 = vshll.u32 %v7196_v58, 16  ;;  %v602_v18 = vshll.u32 %v7200_v62, 16 }
  0x33   : > { %v576_v14 = vor.u32 %v575_v63, %v571_v53  ;;  %v597_v16 = vshll.u32 %v7209_v9, 16  ;;  %v7217_v23 = vsel %vm473_vm4, %v564_v50, %v568_v51  ;;  %v583_v27 = vshrl.u32 %v7192_v55, 16  ;;  %v255_v50 = vld [vmem:[%s7035_s27 + $0xe8] sm:$0xff] }
  0x34   : > { %v357_v28 = vor.u32 %v355_v13, %v354_v11  ;;  %v269_v29 = vpack.c.bf16 %v249_v8, %v248_v3  ;;  %v587_v31 = vrot.slane %v585_v2, 1  ;;  %v595_v32 = vshrl.u32 %v7209_v9, 16 }
  0x35   : > { %v7221_v30 = vsel %vm473_vm4, %v576_v14, %v580_v1  ;;  %v599_v33 = vrot.slane %v597_v16, 1  ;;  %v270_v43 = vpack.c.bf16 %v251_v22, %v250_v19  ;;  %v592_v51 = vrot.slane %v590_v15, 1 }
  0x36   : > { %v7227_v35 = vsel %vm7008_vm3, 0, %v357_v28  ;;  %v359_v37 = vshrl.u32 %v269_v29, 16  ;;  %v362_v41 = vshll.u32 %v269_v29, 16  ;;  %v604_v53 = vrot.slane %v602_v18, 1 }
  0x37   : > { %v609_v54 = vshll.u32 %v7227_v35, 16  ;;  %v7237_v59 = vsel %vm7008_vm3, %v354_v11, 0  ;;  %v366_v1 = vshrl.u32 %v270_v43, 16  ;;  %v369_v2 = vshll.u32 %v270_v43, 16 }
  0x38   : > { %v361_v63 = vrot.slane %v359_v37, 7  ;;  %v588_v3 = vor.u32 %v587_v31, %v583_v27  ;;  %v600_v8 = vor.u32 %v599_v33, %v595_v32  ;;  %v271_v13 = vpack.c.bf16 %v253_v45, %v252_v34 }
  0x39   : > { %5788 = vmatmul.mubr.msk.bf16.gmra.mrb[12].mxu0 %vm764_vm5, %v7217_v23  ;;  %v272_v14 = vpack.c.bf16 %v255_v50, %v254_v46  ;;  %v368_v18 = vrot.slane %v366_v1, 7  ;;  %v607_v19 = vshrl.u32 %v7227_v35, 16  ;;  %v611_v11 = vrot.slane %v609_v54, 1 }
  0x3a   : > { %5791 = vmatprep.mubr.msk.bf16.mxu0 %vm764_vm5, %v7221_v30  ;;  %v364_v15 = vor.u32 %v362_v41, %v361_v63  ;;  %v7243_v16 = vsel %vm7008_vm3, %v361_v63, 0  ;;  %v614_v22 = vshll.u32 %v7237_v59, 16  ;;  %v373_v28 = vshrl.u32 %v271_v13, 16 }
  0x3b   : > { %v371_v27 = vor.u32 %v369_v2, %v368_v18  ;;  %v376_v31 = vshll.u32 %v271_v13, 16  ;;  %v380_v32 = vshrl.u32 %v272_v14, 16  ;;  %v7252_v33 = vsel %vm473_vm4, %v588_v3, %v592_v51 }
  0x3c   : > { %v7249_v29 = vsel %vm7008_vm3, 0, %v364_v15  ;;  %v7255_v34 = vsel %vm473_vm4, %v600_v8, %v604_v53  ;;  %v626_v41 = vshll.u32 %v7243_v16, 16  ;;  %v375_v46 = vrot.slane %v373_v28, 7 }
  0x3d   : > { %v621_v37 = vshll.u32 %v7249_v29, 16  ;;  %v619_v43 = vshrl.u32 %v7249_v29, 16  ;;  %v7262_v45 = vsel %vm7008_vm3, 0, %v371_v27  ;;  %v382_v50 = vrot.slane %v380_v32, 7 }
  0x3e   : > { %v383_v63 = vshll.u32 %v272_v14, 16  ;;  %v612_v51 = vor.u32 %v611_v11, %v607_v19  ;;  %v616_v53 = vrot.slane %v614_v22, 1  ;;  %v378_v1 = vor.u32 %v376_v31, %v375_v46 }
  0x3f   : > { %v623_v54 = vrot.slane %v621_v37, 1  ;;  %v628_v2 = vrot.slane %v626_v41, 1  ;;  %v7270_v3 = vsel %vm7008_vm3, %v368_v18, 0  ;;  %v633_v8 = vshll.u32 %v7262_v45, 16 }
  0x40   : > { %v7275_v14 = vsel %vm7008_vm3, 0, %v378_v1  ;;  %v7279_v15 = vsel %vm7008_vm3, %v375_v46, 0  ;;  %v385_v19 = vor.u32 %v383_v63, %v382_v50  ;;  %v7283_v22 = vsel %vm473_vm4, %v612_v51, %v616_v53 }
  0x41   : > { %5792 = vmatmul.mubr.msk.bf16.gmra.mrb[16].mxu0 %vm764_vm5, %v7252_v33  ;;  %v624_v13 = vor.u32 %v623_v54, %v619_v43  ;;  %v645_v11 = vshll.u32 %v7275_v14, 16  ;;  %v631_v18 = vshrl.u32 %v7262_v45, 16  ;;  %v635_v28 = vrot.slane %v633_v8, 1 }
  0x42   : > { %5795 = vmatprep.mubr.msk.bf16.mxu0 %vm764_vm5, %v7255_v34  ;;  %v638_v27 = vshll.u32 %v7270_v3, 16  ;;  %v650_v31 = vshll.u32 %v7279_v15, 16  ;;  %v643_v37 = vshrl.u32 %v7275_v14, 16  ;;  %v7294_v43 = vsel %vm7008_vm3, 0, %v385_v19 }
  0x43   : > { %v7289_v32 = vsel %vm473_vm4, %v624_v13, %v628_v2  ;;  %v647_v41 = vrot.slane %v645_v11, 1  ;;  %v636_v46 = vor.u32 %v635_v28, %v631_v18  ;;  %v657_v63 = vshll.u32 %v7294_v43, 16 }
  0x44   : > { %v640_v54 = vrot.slane %v638_v27, 1  ;;  %v652_v53 = vrot.slane %v650_v31, 1  ;;  %v7303_v1 = vsel %vm7008_vm3, %v382_v50, 0  ;;  %v655_v8 = vshrl.u32 %v7294_v43, 16  ;;  %v467_v31 = vld [vmem:[%s8511_s1 + $0x6] sm:$0x3] }
  0x45   : > { %v648_v51 = vor.u32 %v647_v41, %v643_v37  ;;  %v659_v13 = vrot.slane %v657_v63, 1  ;;  %v662_v19 = vshll.u32 %v7303_v1, 16  ;;  %v1223_v27 = vsel %vm813_vm0, %v7113_v25, 0 }
  0x46   : > { %v7306_v2 = vsel %vm473_vm4, %v636_v46, %v640_v54  ;;  %v713_v25 = vrot.slane %v7017_v6, 1  ;;  %v714_v37 = vrot.slane %v7021_v7, 1  ;;  %v717_v46 = vrot.slane %v7057_v42, 1  ;;  %v468_v42 = vld [vmem:[%s8511_s1 + $0x8] sm:$0x3] }
  0x47   : > { %v7311_v11 = vsel %vm473_vm4, %v648_v51, %v652_v53  ;;  %v660_v18 = vor.u32 %v659_v13, %v655_v8  ;;  %v664_v50 = vrot.slane %v662_v19, 1  ;;  %v716_v54 = vrot.slane %v7066_v49, 1 }
  0x48   : > { %v7361_v41 = vsel %vm712_vm6, %v713_v25, %v714_v37  ;;  %v719_v63 = vrot.slane %v7077_v56, 1  ;;  %v720_v51 = vrot.slane %v7062_v47, 1  ;;  %v1421_v53 = vsel %vm813_vm0, %v467_v31, 0 }
  0x49   : > { %5796 = vmatmul.mubr.msk.bf16.gmra.mrb[20].mxu0 %vm764_vm5, %v7283_v22  ;;  %v7318_v28 = vsel %vm473_vm4, %v660_v18, %v664_v50  ;;  %v7372_v7 = vsel %vm712_vm6, %v716_v54, %v717_v46  ;;  %v722_v47 = vrot.slane %v7083_v60, 1  ;;  %v723_v13 = vrot.slane %v7071_v52, 1 }
  0x4a   : > { %5799 = vmatprep.mubr.msk.bf16.mxu0 %vm764_vm5, %v7289_v32  ;;  %v7376_v8 = vsel %vm712_vm6, %v719_v63, %v720_v51  ;;  %v725_v19 = vrot.slane %v7099_v17, 1  ;;  %v726_v18 = vrot.slane %v7094_v10, 1  ;;  %v728_v52 = vrot.slane %v7128_v39, 1 }
  0x4b   : > { %v7391_v50 = vsel %vm712_vm6, %v722_v47, %v723_v13  ;;  %v731_v10 = vrot.slane %v7154_v5, 1  ;;  %v732_v25 = vrot.slane %v7145_v61, 1  ;;  %v734_v54 = vrot.slane %v7162_v12, 1 }
  0x4c   : > { %v737_v63 = vrot.slane %v7184_v44, 1  ;;  %v738_v61 = vrot.slane %v7173_v36, 1  ;;  %v740_v47 = vrot.slane %v7192_v55, 1  ;;  %v743_v13 = vrot.slane %v7209_v9, 1 }
  0x4d   : > { %v7408_v46 = vsel %vm712_vm6, %v731_v10, %v732_v25  ;;  %v744_v36 = vrot.slane %v7200_v62, 1  ;;  %v750_v62 = vrot.slane %v7243_v16, 1  ;;  %v756_v16 = vrot.slane %v7279_v15, 1 }
  0x4e   : > { %v1620_v15 = vsel %vm813_vm0, %v468_v42, 0 }
  0x51   : > { %5800 = vmatmul.mubr.msk.bf16.gmra.mrb[24].mxu0 %vm764_vm5, %v7306_v2 }
  0x52   : > { %5803 = vmatprep.mubr.msk.bf16.mxu0 %vm764_vm5, %v7311_v11 }
  0x59   : > { %5804 = vmatmul.mubr.msk.bf16.gmra.mrb[28].mxu0 %vm764_vm5, %v7318_v28 }
  0x5a   : > { %5809 = vmatprep.mubr.msk.bf16.mxu0 %vm764_vm5, %v7017_v6 }
  0x61   : > { %5810 = vmatmul.mubr.msk.bf16.vlgmr.msra.gmra.mrb[0].mxu0 %vm764_vm5, %v7066_v49 }
  0x62   : > { %5842 = vmatpush3.bf16.msra.mxu0 %v1223_v27  ;;  %5813 = vmatprep.mubr.msk.bf16.mxu0 %vm764_vm5, %v7077_v56  ;;  %v7394_v27 = vsel %vm712_vm6, %v725_v19, %v726_v18  ;;  %v7436_v18 = vsel %vm712_vm6, %v743_v13, %v744_v36  ;;  %v469_v13 = vld [vmem:[%s8511_s1 + $0xa] sm:$0x3] }
  0x63   : > { %6900 = vmatprep.subr.msk.bf16.mxu0 %vm813_vm0, %v467_v31  ;;  %v729_v31 = vrot.slane %v7108_v24, 1  ;;  %v735_v24 = vrot.slane %v7150_v0, 1  ;;  %v741_v0 = vrot.slane %v7196_v58, 1  ;;  %v747_v58 = vrot.slane %v7237_v59, 1 }
  0x64   : > { %v753_v59 = vrot.slane %v7270_v3, 1  ;;  %v759_v3 = vrot.slane %v7303_v1, 1  ;;  %v257_v1 = vld [vmem:[%s7035_s27 + $0xf8] sm:$0xff] }
  0x65   : > { %v7405_v37 = vsel %vm712_vm6, %v728_v52, %v729_v31  ;;  %v7419_v51 = vsel %vm712_vm6, %v734_v54, %v735_v24  ;;  %v7433_v19 = vsel %vm712_vm6, %v740_v47, %v741_v0  ;;  %v746_v52 = vrot.slane %v7227_v35, 1 }
  0x66   : > { %v749_v31 = vrot.slane %v7249_v29, 1  ;;  %v752_v54 = vrot.slane %v7262_v45, 1  ;;  %v755_v24 = vrot.slane %v7275_v14, 1  ;;  %v758_v47 = vrot.slane %v7294_v43, 1 }
  0x67   : > { %v7447_v10 = vsel %vm712_vm6, %v746_v52, %v747_v58 }
  0x68   : > { %v7450_v25 = vsel %vm712_vm6, %v749_v31, %v750_v62  ;;  %v7473_v0 = vsel %vm712_vm6, %v758_v47, %v759_v3 }
  0x69   : > { %5814 = vmatmul.mubr.msk.bf16.gmra.mrb[4].mxu0 %vm764_vm5, %v7083_v60 }
  0x6a   : > { %5817 = vmatprep.mubr.msk.bf16.mxu0 %vm764_vm5, %v7099_v17 }
  0x71   : > { %5818 = vmatmul.mubr.msk.bf16.gmra.mrb[8].mxu0 %vm764_vm5, %v7128_v39 }
  0x72   : > { %5821 = vmatprep.mubr.msk.bf16.mxu0 %vm764_vm5, %v7154_v5 }
  0x79   : > { %5822 = vmatmul.mubr.msk.bf16.gmra.mrb[12].mxu0 %vm764_vm5, %v7162_v12 }
  0x7a   : > { %5825 = vmatprep.mubr.msk.bf16.mxu0 %vm764_vm5, %v7184_v44 }
  0x81   : > { %5826 = vmatmul.mubr.msk.bf16.gmra.mrb[16].mxu0 %vm764_vm5, %v7192_v55 }
  0x82   : > { %5829 = vmatprep.mubr.msk.bf16.mxu0 %vm764_vm5, %v7209_v9 }
  0x89   : > { %5830 = vmatmul.mubr.msk.bf16.gmra.mrb[20].mxu0 %vm764_vm5, %v7227_v35 }
  0x8a   : > { %5833 = vmatprep.mubr.msk.bf16.mxu0 %vm764_vm5, %v7249_v29 }
  0x91   : > { %5834 = vmatmul.mubr.msk.bf16.gmra.mrb[24].mxu0 %vm764_vm5, %v7262_v45 }
  0x92   : > { %5837 = vmatprep.mubr.msk.bf16.mxu0 %vm764_vm5, %v7275_v14 }
  0x99   : > { %5838 = vmatmul.mubr.msk.bf16.gmra.mrb[28].mxu0 %vm764_vm5, %v7294_v43 }
  0x9a   : > { %5843 = vmatprep.mubr.msk.bf16.mxu0 %vm764_vm5, %v7361_v41 }
  0xa1   : > { %5844 = vmatmul.mubr.msk.bf16.vlgmr.msra.gmra.mrb[0].mxu0 %vm764_vm5, %v7372_v7 }
  0xa2   : > { %5876 = vmatpush3.bf16.msra.mxu0 %v1421_v53  ;;  %5847 = vmatprep.mubr.msk.bf16.mxu0 %vm764_vm5, %v7376_v8  ;;  %v7422_v53 = vsel %vm712_vm6, %v737_v63, %v738_v61  ;;  %v7461_v63 = vsel %vm712_vm6, %v752_v54, %v753_v59  ;;  %v7464_v61 = vsel %vm712_vm6, %v755_v24, %v756_v16  ;;  %v1819_v54 = vsel %vm813_vm0, %v469_v13, 0  ;;  %v470_v59 = vld [vmem:[%s8511_s1 + $0xc] sm:$0x3] }
  0xa3   : > { %6901 = vmatprep.subr.msk.bf16.mxu0 %vm813_vm0, %v468_v42 }
  0xa9   : > { %5848 = vmatmul.mubr.msk.bf16.gmra.mrb[4].mxu0 %vm764_vm5, %v7391_v50 }
  0xaa   : > { %5851 = vmatprep.mubr.msk.bf16.mxu0 %vm764_vm5, %v7394_v27 }
  0xb1   : > { %5852 = vmatmul.mubr.msk.bf16.gmra.mrb[8].mxu0 %vm764_vm5, %v7405_v37 }
  0xb2   : > { %5855 = vmatprep.mubr.msk.bf16.mxu0 %vm764_vm5, %v7408_v46 }
  0xb9   : > { %5856 = vmatmul.mubr.msk.bf16.gmra.mrb[12].mxu0 %vm764_vm5, %v7419_v51 }
  0xba   : > { %5859 = vmatprep.mubr.msk.bf16.mxu0 %vm764_vm5, %v7422_v53 }
  0xc1   : > { %5860 = vmatmul.mubr.msk.bf16.gmra.mrb[16].mxu0 %vm764_vm5, %v7433_v19 }
  0xc2   : > { %5863 = vmatprep.mubr.msk.bf16.mxu0 %vm764_vm5, %v7436_v18 }
  0xc9   : > { %5864 = vmatmul.mubr.msk.bf16.gmra.mrb[20].mxu0 %vm764_vm5, %v7447_v10 }
  0xca   : > { %5867 = vmatprep.mubr.msk.bf16.mxu0 %vm764_vm5, %v7450_v25 }
  0xd1   : > { %5868 = vmatmul.mubr.msk.bf16.gmra.mrb[24].mxu0 %vm764_vm5, %v7461_v63 }
  0xd2   : > { %5871 = vmatprep.mubr.msk.bf16.mxu0 %vm764_vm5, %v7464_v61 }
  0xd9   : > { %5872 = vmatmul.mubr.msk.bf16.gmra.mrb[28].mxu0 %vm764_vm5, %v7473_v0 }
  0xda   : > { %5877 = vmatprep.mubr.msk.bf16.mxu0 %vm764_vm5, %v7066_v49  ;;  %v256_v49 = vld [vmem:[%s7035_s27 + $0xf0] sm:$0xff] }
  0xdb   : > { %v273_v42 = vpack.c.bf16 %v257_v1, %v256_v49  ;;  %v2015_v1 = vsel %vm813_vm0, %v470_v59, 0 }
  0xdd   : > { %v387_v36 = vshrl.u32 %v273_v42, 16  ;;  %v390_v58 = vshll.u32 %v273_v42, 16  ;;  %v471_v42 = vld [vmem:[%s8511_s1 + $0xe] sm:$0x3] }
  0xdf   : > { %v389_v52 = vrot.slane %v387_v36, 7 }
  0xe1   : > { %5878 = vmatmul.mubr.msk.bf16.vlgmr.msra.gmra.mrb[0].mxu0 %vm764_vm5, %v7077_v56  ;;  %v392_v31 = vor.u32 %v390_v58, %v389_v52  ;;  %v463_v24 = vsel %vm7008_vm3, %v389_v52, 0  ;;  %v2211_v58 = vsel %vm813_vm0, %v471_v42, 0 }
  0xe2   : > { %5910 = vmatpush3.bf16.msra.mxu0 %v1620_v15  ;;  %5881 = vmatprep.mubr.msk.bf16.mxu0 %vm764_vm5, %v7083_v60  ;;  %v674_v3 = vshll.u32 %v463_v24, 16  ;;  %v762_v36 = vrot.slane %v463_v24, 1 }
  0xe3   : > { %6902 = vmatprep.subr.msk.bf16.mxu0 %vm813_vm0, %v469_v13  ;;  %v7516_v62 = vsel %vm7008_vm3, 0, %v392_v31  ;;  %v472_v31 = vld [vmem:[%s8511_s1 + $0x10] sm:$0x3] }
  0xe4   : > { %v667_v16 = vshrl.u32 %v7516_v62, 16  ;;  %v676_v13 = vrot.slane %v674_v3, 1 }
  0xe9   : > { %5882 = vmatmul.mubr.msk.bf16.gmra.mrb[4].mxu0 %vm764_vm5, %v7099_v17 }
  0xea   : > { %5885 = vmatprep.mubr.msk.bf16.mxu0 %vm764_vm5, %v7128_v39 }
  0xf1   : > { %5886 = vmatmul.mubr.msk.bf16.gmra.mrb[8].mxu0 %vm764_vm5, %v7154_v5 }
  0xf2   : > { %5889 = vmatprep.mubr.msk.bf16.mxu0 %vm764_vm5, %v7162_v12 }
  0xf9   : > { %5890 = vmatmul.mubr.msk.bf16.gmra.mrb[12].mxu0 %vm764_vm5, %v7184_v44 }
  0xfa   : > { %5893 = vmatprep.mubr.msk.bf16.mxu0 %vm764_vm5, %v7192_v55 }
 0x101   : > { %5894 = vmatmul.mubr.msk.bf16.gmra.mrb[16].mxu0 %vm764_vm5, %v7209_v9 }
 0x102   : > { %5897 = vmatprep.mubr.msk.bf16.mxu0 %vm764_vm5, %v7227_v35 }
 0x109   : > { %5898 = vmatmul.mubr.msk.bf16.gmra.mrb[20].mxu0 %vm764_vm5, %v7249_v29 }
 0x10a   : > { %5901 = vmatprep.mubr.msk.bf16.mxu0 %vm764_vm5, %v7262_v45 }
 0x111   : > { %5902 = vmatmul.mubr.msk.bf16.gmra.mrb[24].mxu0 %vm764_vm5, %v7275_v14 }
 0x112   : > { %5905 = vmatprep.mubr.msk.bf16.mxu0 %vm764_vm5, %v7294_v43 }
 0x119   : > { %5906 = vmatmul.mubr.msk.bf16.gmra.mrb[28].mxu0 %vm764_vm5, %v7516_v62 }
 0x11a   : > { %5911 = vmatprep.mubr.msk.bf16.mxu0 %vm764_vm5, %v7102_v20  ;;  %v669_v20 = vshll.u32 %v7516_v62, 16 }
 0x11c   : > { %v671_v47 = vrot.slane %v669_v20, 1 }
 0x11e   : > { %v672_v15 = vor.u32 %v671_v47, %v667_v16 }
 0x120   : > { %v677_v49 = vsel %vm473_vm4, %v672_v15, %v676_v13 }
 0x121   : > { %5912 = vmatmul.mubr.msk.bf16.vlgmr.msra.gmra.mrb[0].mxu0 %vm764_vm5, %v7118_v26 }
 0x122   : > { %5944 = vmatpush3.bf16.msra.mxu0 %v1819_v54  ;;  %5915 = vmatprep.mubr.msk.bf16.mxu0 %vm764_vm5, %v7136_v48 }
 0x123   : > { %6903 = vmatprep.subr.msk.bf16.mxu0 %vm813_vm0, %v470_v59 }
 0x129   : > { %5916 = vmatmul.mubr.msk.bf16.gmra.mrb[4].mxu0 %vm764_vm5, %v7141_v57 }
 0x12a   : > { %5919 = vmatprep.mubr.msk.bf16.mxu0 %vm764_vm5, %v7176_v40 }
 0x131   : > { %5920 = vmatmul.mubr.msk.bf16.gmra.mrb[8].mxu0 %vm764_vm5, %v7180_v38 }
 0x132   : > { %5923 = vmatprep.mubr.msk.bf16.mxu0 %vm764_vm5, %v7217_v23 }
 0x139   : > { %5924 = vmatmul.mubr.msk.bf16.gmra.mrb[12].mxu0 %vm764_vm5, %v7221_v30 }
 0x13a   : > { %5927 = vmatprep.mubr.msk.bf16.mxu0 %vm764_vm5, %v7252_v33 }
 0x141   : > { %5928 = vmatmul.mubr.msk.bf16.gmra.mrb[16].mxu0 %vm764_vm5, %v7255_v34 }
 0x142   : > { %5931 = vmatprep.mubr.msk.bf16.mxu0 %vm764_vm5, %v7283_v22 }
 0x149   : > { %5932 = vmatmul.mubr.msk.bf16.gmra.mrb[20].mxu0 %vm764_vm5, %v7289_v32 }
 0x14a   : > { %5935 = vmatprep.mubr.msk.bf16.mxu0 %vm764_vm5, %v7306_v2 }
 0x151   : > { %5936 = vmatmul.mubr.msk.bf16.gmra.mrb[24].mxu0 %vm764_vm5, %v7311_v11 }
 0x152   : > { %5939 = vmatprep.mubr.msk.bf16.mxu0 %vm764_vm5, %v7318_v28 }
 0x159   : > { %5940 = vmatmul.mubr.msk.bf16.gmra.mrb[28].mxu0 %vm764_vm5, %v677_v49 }
 0x15a   : > { %5945 = vmatprep.mubr.msk.bf16.mxu0 %vm764_vm5, %v7372_v7  ;;  %v761_v7 = vrot.slane %v7516_v62, 1 }
 0x15c   : > { %v763_v52 = vsel %vm712_vm6, %v761_v7, %v762_v36 }
 0x161   : > { %5946 = vmatmul.mubr.msk.bf16.vlgmr.msra.gmra.mrb[0].mxu0 %vm764_vm5, %v7376_v8 }
 0x162   : > { %5978 = vmatpush3.bf16.msra.mxu0 %v2015_v1  ;;  %5949 = vmatprep.mubr.msk.bf16.mxu0 %vm764_vm5, %v7391_v50 }
 0x163   : > { %6904 = vmatprep.subr.msk.bf16.mxu0 %vm813_vm0, %v471_v42 }
 0x169   : > { %5950 = vmatmul.mubr.msk.bf16.gmra.mrb[4].mxu0 %vm764_vm5, %v7394_v27 }
 0x16a   : > { %5953 = vmatprep.mubr.msk.bf16.mxu0 %vm764_vm5, %v7405_v37 }
 0x171   : > { %5954 = vmatmul.mubr.msk.bf16.gmra.mrb[8].mxu0 %vm764_vm5, %v7408_v46 }
 0x172   : > { %5957 = vmatprep.mubr.msk.bf16.mxu0 %vm764_vm5, %v7419_v51 }
 0x179   : > { %5958 = vmatmul.mubr.msk.bf16.gmra.mrb[12].mxu0 %vm764_vm5, %v7422_v53 }
 0x17a   : > { %5961 = vmatprep.mubr.msk.bf16.mxu0 %vm764_vm5, %v7433_v19 }
 0x181   : > { %5962 = vmatmul.mubr.msk.bf16.gmra.mrb[16].mxu0 %vm764_vm5, %v7436_v18 }
 0x182   : > { %5965 = vmatprep.mubr.msk.bf16.mxu0 %vm764_vm5, %v7447_v10 }
 0x189   : > { %5966 = vmatmul.mubr.msk.bf16.gmra.mrb[20].mxu0 %vm764_vm5, %v7450_v25 }
 0x18a   : > { %5969 = vmatprep.mubr.msk.bf16.mxu0 %vm764_vm5, %v7461_v63 }
 0x191   : > { %5970 = vmatmul.mubr.msk.bf16.gmra.mrb[24].mxu0 %vm764_vm5, %v7464_v61 }
 0x192   : > { %5973 = vmatprep.mubr.msk.bf16.mxu0 %vm764_vm5, %v7473_v0 }
 0x199   : > { %5974 = vmatmul.mubr.msk.bf16.gmra.mrb[28].mxu0 %vm764_vm5, %v763_v52 }
 0x19a   : > { %5979 = vmatprep.mubr.msk.bf16.mxu0 %vm764_vm5, %v7077_v56  ;;  %v2407_v56 = vsel %vm813_vm0, %v472_v31, 0 }
 0x1a1   : > { %5980 = vmatmul.mubr.msk.bf16.vlgmr.msra.gmra.mrb[0].mxu0 %vm764_vm5, %v7083_v60  ;;  %v2866_v60 = vld [vmem:[%s8513_s3 + $0x2] sm:$0x3] }
 0x1a2   : > { %6012 = vmatpush3.bf16.msra.mxu0 %v2211_v58  ;;  %5983 = vmatprep.mubr.msk.bf16.mxu0 %vm764_vm5, %v7099_v17  ;;  %v3192_v17 = vsel %vm813_vm0, %v2866_v60, 0 }
 0x1a3   : > { %6905 = vmatprep.subr.msk.bf16.mxu0 %vm813_vm0, %v472_v31  ;;  %6906 = vmatprep.subr.msk.bf16.mxu1 %vm813_vm0, %v2866_v60 }
 0x1a4   : > { %6080 = vmatpush3.bf16.msra.mxu1 %v3192_v17 }
 0x1a9   : > { %5984 = vmatmul.mubr.msk.bf16.gmra.mrb[4].mxu0 %vm764_vm5, %v7128_v39  ;;  %v7711_v39 = vld [vmem:[%s8512_s2] ss:$0 sm:$0xff] }
 0x1aa   : > { %5987 = vmatprep.mubr.msk.bf16.mxu0 %vm764_vm5, %v7154_v5 }
 0x1b1   : > { %5988 = vmatmul.mubr.msk.bf16.gmra.mrb[8].mxu0 %vm764_vm5, %v7162_v12 }
 0x1b2   : > { %5991 = vmatprep.mubr.msk.bf16.mxu0 %vm764_vm5, %v7184_v44 }
 0x1b9   : > { %5992 = vmatmul.mubr.msk.bf16.gmra.mrb[12].mxu0 %vm764_vm5, %v7192_v55 }
 0x1ba   : > { %5995 = vmatprep.mubr.msk.bf16.mxu0 %vm764_vm5, %v7209_v9 }
 0x1c1   : > { %5996 = vmatmul.mubr.msk.bf16.gmra.mrb[16].mxu0 %vm764_vm5, %v7227_v35 }
 0x1c2   : > { %5999 = vmatprep.mubr.msk.bf16.mxu0 %vm764_vm5, %v7249_v29 }
 0x1c9   : > { %6000 = vmatmul.mubr.msk.bf16.gmra.mrb[20].mxu0 %vm764_vm5, %v7262_v45 }
 0x1ca   : > { %6003 = vmatprep.mubr.msk.bf16.mxu0 %vm764_vm5, %v7275_v14 }
 0x1d1   : > { %6004 = vmatmul.mubr.msk.bf16.gmra.mrb[24].mxu0 %vm764_vm5, %v7294_v43 }
 0x1d2   : > { %6007 = vmatprep.mubr.msk.bf16.mxu0 %vm764_vm5, %v7516_v62 }
 0x1d9   : > { %6008 = vmatmul.mubr.msk.bf16.gmra.mrb[28].mxu0 %vm764_vm5, %v7017_v6 }
 0x1da   : > { %6013 = vmatprep.mubr.msk.bf16.mxu0 %vm764_vm5, %v7118_v26  ;;  %v2865_v26 = vld [vmem:[%s8513_s3] sm:$0x3] }
 0x1db   : > { %6907 = vmatprep.subr.msk.bf16.mxu1 %vm813_vm0, %v2865_v26  ;;  %v3386_v54 = vsel %vm813_vm0, %v2865_v26, 0 }
 0x1e1   : > { %6014 = vmatmul.mubr.msk.bf16.vlgmr.msra.gmra.mrb[0].mxu0 %vm764_vm5, %v7136_v48 }
 0x1e2   : > { %6046 = vmatpush3.bf16.msra.mxu0 %v2407_v56  ;;  %6017 = vmatprep.mubr.msk.bf16.mxu0 %vm764_vm5, %v7141_v57 }
 0x1e9   : > { %6018 = vmatmul.mubr.msk.bf16.gmra.mrb[4].mxu0 %vm764_vm5, %v7176_v40 }
 0x1ea   : > { %6021 = vmatprep.mubr.msk.bf16.mxu0 %vm764_vm5, %v7180_v38 }
 0x1f1   : > { %6022 = vmatmul.mubr.msk.bf16.gmra.mrb[8].mxu0 %vm764_vm5, %v7217_v23 }
 0x1f2   : > { %6025 = vmatprep.mubr.msk.bf16.mxu0 %vm764_vm5, %v7221_v30 }
 0x1f9   : > { %6026 = vmatmul.mubr.msk.bf16.gmra.mrb[12].mxu0 %vm764_vm5, %v7252_v33 }
 0x1fa   : > { %6029 = vmatprep.mubr.msk.bf16.mxu0 %vm764_vm5, %v7255_v34 }
 0x201   : > { %6030 = vmatmul.mubr.msk.bf16.gmra.mrb[16].mxu0 %vm764_vm5, %v7283_v22 }
 0x202   : > { %6033 = vmatprep.mubr.msk.bf16.mxu0 %vm764_vm5, %v7289_v32 }
 0x209   : > { %6034 = vmatmul.mubr.msk.bf16.gmra.mrb[20].mxu0 %vm764_vm5, %v7306_v2 }
 0x20a   : > { %6037 = vmatprep.mubr.msk.bf16.mxu0 %vm764_vm5, %v7311_v11 }
 0x211   : > { %6038 = vmatmul.mubr.msk.bf16.gmra.mrb[24].mxu0 %vm764_vm5, %v7318_v28 }
 0x212   : > { %6041 = vmatprep.mubr.msk.bf16.mxu0 %vm764_vm5, %v677_v49 }
 0x219   : > { %6042 = vmatmul.mubr.msk.bf16.gmra.mrb[28].mxu0 %vm764_vm5, %v7044_v21 }
 0x21a   : > { %6047 = vmatprep.mubr.msk.bf16.mxu0 %vm764_vm5, %v7376_v8 }
 0x221   : > { %6048 = vmatmul.mubr.msk.bf16.vlgmr.msra.gmra.mrb[0].mxu0 %vm764_vm5, %v7391_v50 }
 0x222   : > { %6051 = vmatprep.mubr.msk.bf16.mxu0 %vm764_vm5, %v7394_v27 }
 0x229   : > { %6052 = vmatmul.mubr.msk.bf16.gmra.mrb[4].mxu0 %vm764_vm5, %v7405_v37 }
 0x22a   : > { %6055 = vmatprep.mubr.msk.bf16.mxu0 %vm764_vm5, %v7408_v46 }
 0x231   : > { %6056 = vmatmul.mubr.msk.bf16.gmra.mrb[8].mxu0 %vm764_vm5, %v7419_v51 }
 0x232   : > { %6059 = vmatprep.mubr.msk.bf16.mxu0 %vm764_vm5, %v7422_v53 }
 0x239   : > { %6060 = vmatmul.mubr.msk.bf16.gmra.mrb[12].mxu0 %vm764_vm5, %v7433_v19 }
 0x23a   : > { %6063 = vmatprep.mubr.msk.bf16.mxu0 %vm764_vm5, %v7436_v18 }
 0x241   : > { %6064 = vmatmul.mubr.msk.bf16.gmra.mrb[16].mxu0 %vm764_vm5, %v7447_v10 }
 0x242   : > { %6067 = vmatprep.mubr.msk.bf16.mxu0 %vm764_vm5, %v7450_v25 }
 0x249   : > { %6068 = vmatmul.mubr.msk.bf16.gmra.mrb[20].mxu0 %vm764_vm5, %v7461_v63 }
 0x24a   : > { %6071 = vmatprep.mubr.msk.bf16.mxu0 %vm764_vm5, %v7464_v61 }
 0x251   : > { %6072 = vmatmul.mubr.msk.bf16.gmra.mrb[24].mxu0 %vm764_vm5, %v7473_v0 }
 0x252   : > { %6075 = vmatprep.mubr.msk.bf16.mxu0 %vm764_vm5, %v763_v52 }
 0x259   : > { %6076 = vmatmul.mubr.msk.bf16.gmra.mrb[28].mxu0 %vm764_vm5, %v7361_v41 }
 0x2f4   : > { %v6049_v48 = vpop.f32.mrb[0].mxu0 }
 0x2f5   : > { %v2611_v57 = vadd.f32 %v6049_v48, %v7711_v39  ;;  %v2443_v5 = vpop.f32.mrb[1].mxu0 }
 0x2f6   : > { %v2609_v12 = vadd.f32 %v7711_v39, %v2443_v5  ;;  %v6050_v40 = vpop.f32.mrb[2].mxu0 }
 0x2f7   : > { %v2612_v38 = vadd.f32 %v6050_v40, %v7711_v39  ;;  %v2446_v44 = vpop.f32.mrb[3].mxu0  ;;  %v2643_v9 = vmax.f32 %v2611_v57, 0.0 }
 0x2f8   : > { %v2610_v55 = vadd.f32 %v7711_v39, %v2446_v44  ;;  %v2641_v30 = vmax.f32 %v2609_v12, 0.0 }
 0x2f9   : > { %v2644_v23 = vmax.f32 %v2612_v38, 0.0 }
 0x2fa   : > { %v2642_v35 = vmax.f32 %v2610_v55, 0.0 }
 0x2fb   : > { %v2674_v29 = vpack.c.bf16 %v2644_v23, %v2643_v9 }
 0x2fc   : > { %v2673_v33 = vpack.c.bf16 %v2642_v35, %v2641_v30  ;;  %v6053_v34 = vpop.f32.mrb[4].mxu0 }
 0x2fd   : > { %v2697_v45 = vshrl.u32 %v2674_v29, 16  ;;  %v2615_v14 = vadd.f32 %v6053_v34, %v7711_v39  ;;  %v2459_v22 = vpop.f32.mrb[5].mxu0  ;;  %v2700_v28 = vshll.u32 %v2674_v29, 16 }
 0x2fe   : > { %v2690_v32 = vshrl.u32 %v2673_v33, 16  ;;  %v2613_v43 = vadd.f32 %v7711_v39, %v2459_v22  ;;  %v6054_v2 = vpop.f32.mrb[6].mxu0  ;;  %v2693_v37 = vshll.u32 %v2673_v33, 16 }
 0x2ff   : > { %v2699_v11 = vrot.slane %v2697_v45, 7  ;;  %v2616_v8 = vadd.f32 %v6054_v2, %v7711_v39  ;;  %v2462_v50 = vpop.f32.mrb[7].mxu0  ;;  %v2647_v19 = vmax.f32 %v2615_v14, 0.0  ;;  %v7762_v2 = vld [vmem:[%s8513_s3 + $0x4] sm:$0x3] }
 0x300   : > { %v2692_v27 = vrot.slane %v2690_v32, 7  ;;  %v2614_v46 = vadd.f32 %v7711_v39, %v2462_v50  ;;  %v2645_v63 = vmax.f32 %v2613_v43, 0.0 }
 0x301   : > { %v2702_v51 = vor.u32 %v2700_v28, %v2699_v11  ;;  %v7723_v53 = vsel %vm7008_vm3, %v2699_v11, 0  ;;  %v2648_v18 = vmax.f32 %v2616_v8, 0.0 }
 0x302   : > { %v2695_v10 = vor.u32 %v2693_v37, %v2692_v27  ;;  %v7727_v25 = vsel %vm7008_vm3, %v2692_v27, 0  ;;  %v2646_v61 = vmax.f32 %v2614_v46, 0.0  ;;  %v2894_v47 = vshll.u32 %v7723_v53, 16 }
 0x303   : > { %v7731_v0 = vsel %vm7008_vm3, 0, %v2702_v51  ;;  %v2676_v62 = vpack.c.bf16 %v2648_v18, %v2647_v19  ;;  %v2882_v16 = vshll.u32 %v7727_v25, 16 }
 0x304   : > { %v7736_v59 = vsel %vm7008_vm3, 0, %v2695_v10  ;;  %v2675_v20 = vpack.c.bf16 %v2646_v61, %v2645_v63  ;;  %v6057_v24 = vpop.f32.mrb[8].mxu0  ;;  %v2887_v49 = vshrl.u32 %v7731_v0, 16  ;;  %v2889_v1 = vshll.u32 %v7731_v0, 16 }
 0x305   : > { %v2711_v3 = vshrl.u32 %v2676_v62, 16  ;;  %v2619_v15 = vadd.f32 %v6057_v24, %v7711_v39  ;;  %v2475_v13 = vpop.f32.mrb[9].mxu0  ;;  %v2714_v42 = vshll.u32 %v2676_v62, 16  ;;  %v2877_v58 = vshll.u32 %v7736_v59, 16 }
 0x306   : > { %v2704_v7 = vshrl.u32 %v2675_v20, 16  ;;  %v2617_v36 = vadd.f32 %v7711_v39, %v2475_v13  ;;  %v6058_v52 = vpop.f32.mrb[10].mxu0  ;;  %v2707_v56 = vshll.u32 %v2675_v20, 16  ;;  %v2875_v26 = vshrl.u32 %v7736_v59, 16 }
 0x307   : > { %v2713_v31 = vrot.slane %v2711_v3, 7  ;;  %v2620_v60 = vadd.f32 %v6058_v52, %v7711_v39  ;;  %v2478_v17 = vpop.f32.mrb[11].mxu0  ;;  %v2651_v57 = vmax.f32 %v2619_v15, 0.0  ;;  %v2879_v12 = vrot.slane %v2877_v58, 1 }
 0x308   : > { %v2706_v48 = vrot.slane %v2704_v7, 7  ;;  %v2618_v5 = vadd.f32 %v7711_v39, %v2478_v17  ;;  %v2649_v40 = vmax.f32 %v2617_v36, 0.0  ;;  %v2884_v44 = vrot.slane %v2882_v16, 1 }
 0x309   : > { %v2652_v38 = vmax.f32 %v2620_v60, 0.0  ;;  %v2891_v55 = vrot.slane %v2889_v1, 1  ;;  %v2716_v9 = vor.u32 %v2714_v42, %v2713_v31  ;;  %v2880_v35 = vor.u32 %v2879_v12, %v2875_v26 }
 0x30a   : > { %v2709_v23 = vor.u32 %v2707_v56, %v2706_v48  ;;  %v2650_v30 = vmax.f32 %v2618_v5, 0.0  ;;  %v7750_v29 = vsel %vm7008_vm3, %v2706_v48, 0  ;;  %v2896_v45 = vrot.slane %v2894_v47, 1 }
 0x30b   : > { %v2678_v33 = vpack.c.bf16 %v2652_v38, %v2651_v57  ;;  %v2892_v34 = vor.u32 %v2891_v55, %v2887_v49  ;;  %v7757_v43 = vsel %vm473_vm4, %v2880_v35, %v2884_v44  ;;  %v7772_v27 = vsel %vm7008_vm3, %v2713_v31, 0 }
 0x30c   : > { %v7754_v14 = vsel %vm7008_vm3, 0, %v2709_v23  ;;  %v2677_v22 = vpack.c.bf16 %v2650_v30, %v2649_v40  ;;  %v6061_v32 = vpop.f32.mrb[12].mxu0  ;;  %6082 = vmatmul.mubr.msk.bf16.vlgmr.msra.gmra.mrb[0].mxu1 %vm764_vm5, %v7757_v43  ;;  %v2906_v19 = vshll.u32 %v7750_v29, 16  ;;  %v7780_v18 = vsel %vm7008_vm3, 0, %v2716_v9 }
 0x30d   : > { %v2725_v11 = vshrl.u32 %v2678_v33, 16  ;;  %v2623_v28 = vadd.f32 %v6061_v32, %v7711_v39  ;;  %v2491_v8 = vpop.f32.mrb[13].mxu0  ;;  %v7768_v50 = vsel %vm473_vm4, %v2892_v34, %v2896_v45  ;;  %6114 = vmatpush3.bf16.msra.mxu1 %v3386_v54  ;;  %v2901_v62 = vshll.u32 %v7754_v14, 16 }
 0x30e   : > { %v2718_v37 = vshrl.u32 %v2677_v22, 16  ;;  %v2621_v46 = vadd.f32 %v7711_v39, %v2491_v8  ;;  %6085 = vmatprep.mubr.msk.bf16.mxu1 %vm764_vm5, %v7768_v50  ;;  %v6062_v51 = vpop.f32.mrb[14].mxu0  ;;  %6908 = vmatprep.subr.msk.bf16.mxu1 %vm813_vm0, %v7762_v2  ;;  %v2728_v54 = vshll.u32 %v2678_v33, 16  ;;  %v2721_v24 = vshll.u32 %v2677_v22, 16 }
 0x30f   : > { %v2727_v10 = vrot.slane %v2725_v11, 7  ;;  %v2624_v63 = vadd.f32 %v6062_v51, %v7711_v39  ;;  %v2494_v61 = vpop.f32.mrb[15].mxu0  ;;  %v2655_v47 = vmax.f32 %v2623_v28, 0.0  ;;  %v2899_v15 = vshrl.u32 %v7754_v14, 16 }
 0x310   : > { %v2720_v20 = vrot.slane %v2718_v37, 7  ;;  %v2622_v16 = vadd.f32 %v7711_v39, %v2494_v61  ;;  %v2903_v13 = vrot.slane %v2901_v62, 1  ;;  %v2653_v1 = vmax.f32 %v2621_v46, 0.0 }
 0x311   : > { %v2656_v3 = vmax.f32 %v2624_v63, 0.0  ;;  %v2730_v49 = vor.u32 %v2728_v54, %v2727_v10  ;;  %v2908_v7 = vrot.slane %v2906_v19, 1  ;;  %v2913_v31 = vshll.u32 %v7780_v18, 16 }
 0x312   : > { %v2654_v42 = vmax.f32 %v2622_v16, 0.0  ;;  %v2723_v36 = vor.u32 %v2721_v24, %v2720_v20  ;;  %v2904_v58 = vor.u32 %v2903_v13, %v2899_v15  ;;  %v7791_v56 = vsel %vm7008_vm3, %v2727_v10, 0 }
 0x313   : > { %v2680_v52 = vpack.c.bf16 %v2656_v3, %v2655_v47  ;;  %v7795_v60 = vsel %vm7008_vm3, %v2720_v20, 0  ;;  %v2918_v48 = vshll.u32 %v7772_v27, 16  ;;  %v2911_v38 = vshrl.u32 %v7780_v18, 16 }
 0x314   : > { %v2679_v17 = vpack.c.bf16 %v2654_v42, %v2653_v1  ;;  %v6065_v26 = vpop.f32.mrb[16].mxu0  ;;  %v7800_v12 = vsel %vm473_vm4, %v2904_v58, %v2908_v7  ;;  %v7805_v44 = vsel %vm7008_vm3, 0, %v2730_v49  ;;  %v2915_v23 = vrot.slane %v2913_v31, 1 }
 0x315   : > { %v2739_v57 = vshrl.u32 %v2680_v52, 16  ;;  %v2627_v5 = vadd.f32 %v6065_v26, %v7711_v39  ;;  %v2507_v40 = vpop.f32.mrb[17].mxu0  ;;  %6086 = vmatmul.mubr.msk.bf16.gmra.mrb[4].mxu1 %vm764_vm5, %v7800_v12  ;;  %v7812_v35 = vsel %vm7008_vm3, 0, %v2723_v36  ;;  %v2920_v28 = vrot.slane %v2918_v48, 1 }
 0x316   : > { %v2732_v55 = vshrl.u32 %v2679_v17, 16  ;;  %v2625_v9 = vadd.f32 %v7711_v39, %v2507_v40  ;;  %v6066_v30 = vpop.f32.mrb[18].mxu0  ;;  %v2735_v34 = vshll.u32 %v2679_v17, 16  ;;  %v2916_v11 = vor.u32 %v2915_v23, %v2911_v38 }
 0x317   : > { %v2741_v33 = vrot.slane %v2739_v57, 7  ;;  %v2628_v45 = vadd.f32 %v6066_v30, %v7711_v39  ;;  %v2510_v22 = vpop.f32.mrb[19].mxu0  ;;  %v2742_v37 = vshll.u32 %v2680_v52, 16  ;;  %v2659_v46 = vmax.f32 %v2627_v5, 0.0 }
 0x318   : > { %v2734_v32 = vrot.slane %v2732_v55, 7  ;;  %v2626_v8 = vadd.f32 %v7711_v39, %v2510_v22  ;;  %v2930_v19 = vshll.u32 %v7795_v60, 16  ;;  %v2657_v63 = vmax.f32 %v2625_v9, 0.0 }
 0x319   : > { %v2660_v51 = vmax.f32 %v2628_v45, 0.0  ;;  %v7818_v61 = vsel %vm473_vm4, %v2916_v11, %v2920_v28  ;;  %v2744_v54 = vor.u32 %v2742_v37, %v2741_v33  ;;  %v7822_v20 = vsel %vm7008_vm3, %v2741_v33, 0 }
 0x31a   : > { %v2737_v10 = vor.u32 %v2735_v34, %v2734_v32  ;;  %v2658_v62 = vmax.f32 %v2626_v8, 0.0  ;;  %6089 = vmatprep.mubr.msk.bf16.mxu1 %vm764_vm5, %v7818_v61  ;;  %v2925_v16 = vshll.u32 %v7812_v35, 16  ;;  %v7829_v47 = vsel %vm7008_vm3, %v2734_v32, 0 }
 0x31b   : > { %v2682_v24 = vpack.c.bf16 %v2660_v51, %v2659_v46  ;;  %v2923_v13 = vshrl.u32 %v7812_v35, 16  ;;  %v2937_v49 = vshll.u32 %v7805_v44, 16  ;;  %v2932_v36 = vrot.slane %v2930_v19, 1 }
 0x31c   : > { %v2681_v3 = vpack.c.bf16 %v2658_v62, %v2657_v63  ;;  %v6069_v15 = vpop.f32.mrb[20].mxu0  ;;  %v7835_v1 = vsel %vm7008_vm3, 0, %v2737_v10  ;;  %v2927_v7 = vrot.slane %v2925_v16, 1  ;;  %v2935_v17 = vshrl.u32 %v7805_v44, 16 }
 0x31d   : > { %v2753_v42 = vshrl.u32 %v2682_v24, 16  ;;  %v2523_v52 = vpop.f32.mrb[21].mxu0  ;;  %v2631_v31 = vadd.f32 %v6069_v15, %v7711_v39  ;;  %v2939_v26 = vrot.slane %v2937_v49, 1  ;;  %v2942_v38 = vshll.u32 %v7791_v56, 16 }
 0x31e   : > { %v2746_v58 = vshrl.u32 %v2681_v3, 16  ;;  %v6070_v48 = vpop.f32.mrb[22].mxu0  ;;  %v2928_v5 = vor.u32 %v2927_v7, %v2923_v13  ;;  %v2629_v40 = vadd.f32 %v7711_v39, %v2523_v52  ;;  %v2749_v23 = vshll.u32 %v2681_v3, 16 }
 0x31f   : > { %v2755_v57 = vrot.slane %v2753_v42, 7  ;;  %v2526_v55 = vpop.f32.mrb[23].mxu0  ;;  %v2940_v30 = vor.u32 %v2939_v26, %v2935_v17  ;;  %v2632_v33 = vadd.f32 %v6070_v48, %v7711_v39  ;;  %v7844_v34 = vsel %vm7008_vm3, 0, %v2744_v54 }
 0x320   : > { %v2748_v9 = vrot.slane %v2746_v58, 7  ;;  %v2756_v45 = vshll.u32 %v2682_v24, 16  ;;  %v7847_v22 = vsel %vm473_vm4, %v2928_v5, %v2932_v36  ;;  %v2944_v32 = vrot.slane %v2942_v38, 1 }
 0x321   : > { %v2663_v28 = vmax.f32 %v2631_v31, 0.0  ;;  %6090 = vmatmul.mubr.msk.bf16.gmra.mrb[8].mxu1 %vm764_vm5, %v7847_v22  ;;  %v2664_v8 = vmax.f32 %v2632_v33, 0.0  ;;  %v2630_v37 = vadd.f32 %v7711_v39, %v2526_v55  ;;  %v2661_v51 = vmax.f32 %v2629_v40, 0.0 }
 0x322   : > { %v2751_v11 = vor.u32 %v2749_v23, %v2748_v9  ;;  %v2758_v46 = vor.u32 %v2756_v45, %v2755_v57  ;;  %v7853_v19 = vsel %vm473_vm4, %v2940_v30, %v2944_v32  ;;  %v2949_v10 = vshll.u32 %v7835_v1, 16 }
 0x323   : > { %v7858_v63 = vsel %vm7008_vm3, %v2755_v57, 0  ;;  %6093 = vmatprep.mubr.msk.bf16.mxu1 %vm764_vm5, %v7853_v19  ;;  %v2684_v62 = vpack.c.bf16 %v2664_v8, %v2663_v28  ;;  %v2662_v54 = vmax.f32 %v2630_v37, 0.0  ;;  %v2954_v16 = vshll.u32 %v7829_v47, 16 }
 0x324   : > { %v6073_v24 = vpop.f32.mrb[24].mxu0  ;;  %v7865_v3 = vsel %vm7008_vm3, 0, %v2751_v11  ;;  %v2947_v15 = vshrl.u32 %v7835_v1, 16  ;;  %v2951_v13 = vrot.slane %v2949_v10, 1  ;;  %v2961_v42 = vshll.u32 %v7844_v34, 16 }
 0x325   : > { %v2539_v49 = vpop.f32.mrb[25].mxu0  ;;  %v2767_v7 = vshrl.u32 %v2684_v62, 16  ;;  %v2683_v36 = vpack.c.bf16 %v2662_v54, %v2661_v51  ;;  %v2635_v52 = vadd.f32 %v6073_v24, %v7711_v39  ;;  %v2959_v58 = vshrl.u32 %v7844_v34, 16 }
 0x326   : > { %v6074_v31 = vpop.f32.mrb[26].mxu0  ;;  %v2770_v17 = vshll.u32 %v2684_v62, 16  ;;  %v2952_v26 = vor.u32 %v2951_v13, %v2947_v15  ;;  %v2956_v48 = vrot.slane %v2954_v16, 1  ;;  %v2963_v57 = vrot.slane %v2961_v42, 1 }
 0x327   : > { %v2542_v5 = vpop.f32.mrb[27].mxu0  ;;  %v2769_v40 = vrot.slane %v2767_v7, 7  ;;  %v2760_v38 = vshrl.u32 %v2683_v36, 16  ;;  %v2633_v55 = vadd.f32 %v7711_v39, %v2539_v49  ;;  %v2966_v23 = vshll.u32 %v7822_v20, 16 }
 0x328   : > { %v7875_v30 = vsel %vm7008_vm3, %v2748_v9, 0  ;;  %v7878_v33 = vsel %vm473_vm4, %v2952_v26, %v2956_v48  ;;  %v2964_v45 = vor.u32 %v2963_v57, %v2959_v58  ;;  %v2636_v32 = vadd.f32 %v6074_v31, %v7711_v39 }
 0x329   : > { %v2772_v11 = vor.u32 %v2770_v17, %v2769_v40  ;;  %v2762_v28 = vrot.slane %v2760_v38, 7  ;;  %v2763_v8 = vshll.u32 %v2683_v36, 16  ;;  %6094 = vmatmul.mubr.msk.bf16.gmra.mrb[12].mxu1 %vm764_vm5, %v7878_v33  ;;  %v2968_v37 = vrot.slane %v2966_v23, 1 }
 0x32a   : > { %v2667_v51 = vmax.f32 %v2635_v52, 0.0  ;;  %v2668_v10 = vmax.f32 %v2636_v32, 0.0  ;;  %v2634_v62 = vadd.f32 %v7711_v39, %v2542_v5  ;;  %v2973_v9 = vshll.u32 %v7865_v3, 16 }
 0x32b   : > { %v7887_v54 = vsel %vm7008_vm3, 0, %v2758_v46  ;;  %v2765_v24 = vor.u32 %v2763_v8, %v2762_v28  ;;  %v2665_v16 = vmax.f32 %v2633_v55, 0.0  ;;  %v7890_v15 = vsel %vm473_vm4, %v2964_v45, %v2968_v37 }
 0x32c   : > { %v6077_v13 = vpop.f32.mrb[28].mxu0  ;;  %6097 = vmatprep.mubr.msk.bf16.mxu1 %vm764_vm5, %v7890_v15  ;;  %v2686_v49 = vpack.c.bf16 %v2668_v10, %v2667_v51  ;;  %v2666_v42 = vmax.f32 %v2634_v62, 0.0  ;;  %v2975_v36 = vrot.slane %v2973_v9, 1  ;;  %v7897_v58 = vsel %vm7008_vm3, 0, %v2772_v11 }
 0x32d   : > { %v2639_v7 = vadd.f32 %v6077_v13, %v7711_v39  ;;  %v2555_v52 = vpop.f32.mrb[29].mxu0  ;;  %v7901_v46 = vsel %vm7008_vm3, %v2762_v28, 0  ;;  %v2971_v31 = vshrl.u32 %v7865_v3, 16  ;;  %v2978_v17 = vshll.u32 %v7875_v30, 16 }
 0x32e   : > { %v6078_v26 = vpop.f32.mrb[30].mxu0  ;;  %v7907_v48 = vsel %vm7008_vm3, 0, %v2765_v24  ;;  %v2781_v57 = vshrl.u32 %v2686_v49, 16  ;;  %v2685_v5 = vpack.c.bf16 %v2666_v42, %v2665_v16  ;;  %v2637_v38 = vadd.f32 %v7711_v39, %v2555_v52 }
 0x32f   : > { %v2558_v55 = vpop.f32.mrb[31].mxu0  ;;  %v2976_v23 = vor.u32 %v2975_v36, %v2971_v31  ;;  %v2980_v45 = vrot.slane %v2978_v17, 1  ;;  %v2983_v32 = vshrl.u32 %v7887_v54, 16  ;;  %v2985_v11 = vshll.u32 %v7887_v54, 16 }
 0x330   : > { %v2783_v28 = vrot.slane %v2781_v57, 7  ;;  %v2784_v8 = vshll.u32 %v2686_v49, 16  ;;  %v2774_v37 = vshrl.u32 %v2685_v5, 16  ;;  %v2990_v51 = vshll.u32 %v7858_v63, 16 }
 0x331   : > { %v7914_v10 = vsel %vm473_vm4, %v2976_v23, %v2980_v45  ;;  %v2987_v62 = vrot.slane %v2985_v11, 1  ;;  %v2640_v9 = vadd.f32 %v6078_v26, %v7711_v39  ;;  %v2638_v24 = vadd.f32 %v7711_v39, %v2558_v55 }
 0x332   : > { %v2776_v16 = vrot.slane %v2774_v37, 7  ;;  %v2777_v13 = vshll.u32 %v2685_v5, 16  ;;  %v2671_v42 = vmax.f32 %v2639_v7, 0.0  ;;  %6098 = vmatmul.mubr.msk.bf16.gmra.mrb[16].mxu1 %vm764_vm5, %v7914_v10  ;;  %v2669_v36 = vmax.f32 %v2637_v38, 0.0 }
 0x333   : > { %v2988_v52 = vor.u32 %v2987_v62, %v2983_v32  ;;  %v2992_v49 = vrot.slane %v2990_v51, 1  ;;  %v2672_v31 = vmax.f32 %v2640_v9, 0.0  ;;  %v2670_v17 = vmax.f32 %v2638_v24, 0.0 }
 0x334   : > { %v7922_v57 = vsel %vm7008_vm3, %v2769_v40, 0  ;;  %v2786_v23 = vor.u32 %v2784_v8, %v2783_v28  ;;  %v2779_v45 = vor.u32 %v2777_v13, %v2776_v16  ;;  %v2997_v26 = vshll.u32 %v7907_v48, 16 }
 0x335   : > { %v7926_v39 = vsel %vm473_vm4, %v2988_v52, %v2992_v49  ;;  %v7928_v7 = vpack.c.bf16 %v2672_v31, %v2671_v42  ;;  %v2687_v5 = vpack.c.bf16 %v2670_v17, %v2669_v36  ;;  %v3002_v38 = vshll.u32 %v7901_v46, 16 }
 0x336   : > { %v7933_v55 = vsel %vm7008_vm3, 0, %v2779_v45  ;;  %6101 = vmatprep.mubr.msk.bf16.mxu1 %vm764_vm5, %v7926_v39  ;;  %v2995_v40 = vshrl.u32 %v7907_v48, 16  ;;  %v2999_v32 = vrot.slane %v2997_v26, 1  ;;  %v3009_v11 = vshll.u32 %v7897_v58, 16 }
 0x337   : > { %v7941_v8 = vsel %vm7008_vm3, %v2783_v28, 0  ;;  %v7945_v37 = vsel %vm7008_vm3, %v2776_v16, 0  ;;  %v2788_v51 = vshrl.u32 %v2687_v5, 16  ;;  %v3007_v62 = vshrl.u32 %v7897_v58, 16 }
 0x338   : > { %v3000_v9 = vor.u32 %v2999_v32, %v2995_v40  ;;  %v3004_v24 = vrot.slane %v3002_v38, 1  ;;  %v3011_v13 = vrot.slane %v3009_v11, 1  ;;  %v3014_v42 = vshll.u32 %v7922_v57, 16 }
 0x339   : > { %v7951_v36 = vsel %vm7008_vm3, 0, %v2786_v23  ;;  %v2790_v52 = vrot.slane %v2788_v51, 7  ;;  %v2791_v49 = vshll.u32 %v2687_v5, 16  ;;  %v3021_v28 = vshll.u32 %v7933_v55, 16 }
 0x33a   : > { %v7955_v31 = vsel %vm473_vm4, %v3000_v9, %v3004_v24  ;;  %v3012_v16 = vor.u32 %v3011_v13, %v3007_v62  ;;  %v3016_v17 = vrot.slane %v3014_v42, 1  ;;  %v3026_v45 = vshll.u32 %v7945_v37, 16 }
 0x33b   : > { %v2793_v26 = vor.u32 %v2791_v49, %v2790_v52  ;;  %6102 = vmatmul.mubr.msk.bf16.gmra.mrb[20].mxu1 %vm764_vm5, %v7955_v31  ;;  %v3019_v23 = vshrl.u32 %v7933_v55, 16  ;;  %v3023_v40 = vrot.slane %v3021_v28, 1  ;;  %v3033_v32 = vshll.u32 %v7951_v36, 16 }
 0x33c   : > { %v7961_v38 = vsel %vm473_vm4, %v3012_v16, %v3016_v17  ;;  %v3038_v11 = vshll.u32 %v7941_v8, 16  ;;  %v3028_v62 = vrot.slane %v3026_v45, 1  ;;  %v7975_v24 = vsel %vm7008_vm3, %v2790_v52, 0 }
 0x33d   : > { %v7966_v5 = vsel %vm7008_vm3, 0, %v2793_v26  ;;  %6105 = vmatprep.mubr.msk.bf16.mxu1 %vm764_vm5, %v7961_v38  ;;  %v3024_v51 = vor.u32 %v3023_v40, %v3019_v23  ;;  %v3031_v13 = vshrl.u32 %v7951_v36, 16  ;;  %v3035_v42 = vrot.slane %v3033_v32, 1 }
 0x33e   : > { %v3045_v9 = vshll.u32 %v7966_v5, 16  ;;  %v3040_v17 = vrot.slane %v3038_v11, 1  ;;  %v3043_v26 = vshrl.u32 %v7966_v5, 16  ;;  %v3050_v23 = vshll.u32 %v7975_v24, 16 }
 0x33f   : > { %v7979_v49 = vsel %vm473_vm4, %v3024_v51, %v3028_v62  ;;  %v3036_v16 = vor.u32 %v3035_v42, %v3031_v13  ;;  %v3595_v11 = vsel %vm813_vm0, %v7762_v2, 0  ;;  %v2868_v51 = vld [vmem:[%s8513_s3 + $0x6] sm:$0x3]  ;;  %v3098_v2 = vrot.slane %v7736_v59, 1 }
 0x340   : > { %v3047_v28 = vrot.slane %v3045_v9, 1  ;;  %v3052_v40 = vrot.slane %v3050_v23, 1  ;;  %v3101_v62 = vrot.slane %v7731_v0, 1  ;;  %v3099_v9 = vrot.slane %v7727_v25, 1 }
 0x341   : > { %v7986_v45 = vsel %vm473_vm4, %v3036_v16, %v3040_v17  ;;  %v3793_v13 = vsel %vm813_vm0, %v2868_v51, 0  ;;  %v3102_v42 = vrot.slane %v7723_v53, 1  ;;  %v2869_v16 = vld [vmem:[%s8513_s3 + $0x8] sm:$0x3]  ;;  %v3104_v53 = vrot.slane %v7754_v14, 1 }
 0x342   : > { %v3048_v52 = vor.u32 %v3047_v28, %v3043_v26  ;;  %v8041_v28 = vsel %vm712_vm6, %v3098_v2, %v3099_v9  ;;  %v3107_v25 = vrot.slane %v7780_v18, 1  ;;  %v3105_v26 = vrot.slane %v7750_v29, 1 }
 0x343   : > { %6106 = vmatmul.mubr.msk.bf16.gmra.mrb[24].mxu1 %vm764_vm5, %v7979_v49  ;;  %v8049_v17 = vsel %vm712_vm6, %v3101_v62, %v3102_v42  ;;  %v3108_v23 = vrot.slane %v7772_v27, 1  ;;  %v3111_v29 = vrot.slane %v7795_v60, 1  ;;  %v3114_v27 = vrot.slane %v7791_v56, 1 }
 0x344   : > { %6109 = vmatprep.mubr.msk.bf16.mxu1 %vm764_vm5, %v7986_v45  ;;  %v7991_v32 = vsel %vm473_vm4, %v3048_v52, %v3052_v40  ;;  %v8059_v52 = vsel %vm712_vm6, %v3104_v53, %v3105_v26  ;;  %v3116_v9 = vrot.slane %v7835_v1, 1  ;;  %v3117_v60 = vrot.slane %v7829_v47, 1 }
 0x345   : > { %v8064_v40 = vsel %vm712_vm6, %v3107_v25, %v3108_v23  ;;  %v3120_v56 = vrot.slane %v7822_v20, 1  ;;  %v3122_v25 = vrot.slane %v7865_v3, 1  ;;  %v3125_v26 = vrot.slane %v7887_v54, 1 }
 0x346   : > { %v8087_v42 = vsel %vm712_vm6, %v3116_v9, %v3117_v60  ;;  %v3123_v47 = vrot.slane %v7875_v30, 1  ;;  %v3126_v20 = vrot.slane %v7858_v63, 1  ;;  %v3129_v30 = vrot.slane %v7901_v46, 1 }
 0x347   : > { %v3132_v63 = vrot.slane %v7922_v57, 1  ;;  %v3137_v60 = vrot.slane %v7951_v36, 1  ;;  %v3135_v46 = vrot.slane %v7945_v37, 1  ;;  %v3138_v57 = vrot.slane %v7941_v8, 1 }
 0x348   : > { %v8101_v23 = vsel %vm712_vm6, %v3122_v25, %v3123_v47  ;;  %v3141_v47 = vrot.slane %v7975_v24, 1  ;;  %v3992_v8 = vsel %vm813_vm0, %v2869_v16, 0 }
 0x349   : > { %v8134_v25 = vsel %vm712_vm6, %v3137_v60, %v3138_v57 }
 0x34b   : > { %6110 = vmatmul.mubr.msk.bf16.gmra.mrb[28].mxu1 %vm764_vm5, %v7991_v32 }
 0x34c   : > { %6115 = vmatprep.mubr.msk.bf16.mxu1 %vm764_vm5, %v7017_v6 }
 0x353   : > { %6116 = vmatmul.mubr.msk.bf16.vlgmr.msra.gmra.mrb[0].mxu1 %vm764_vm5, %v7736_v59 }
 0x354   : > { %6148 = vmatpush3.bf16.msra.mxu1 %v3595_v11  ;;  %6119 = vmatprep.mubr.msk.bf16.mxu1 %vm764_vm5, %v7731_v0  ;;  %v3110_v11 = vrot.slane %v7812_v35, 1 }
 0x355   : > { %6909 = vmatprep.subr.msk.bf16.mxu1 %vm813_vm0, %v2868_v51  ;;  %v3113_v51 = vrot.slane %v7805_v44, 1 }
 0x356   : > { %v8073_v2 = vsel %vm712_vm6, %v3110_v11, %v3111_v29  ;;  %v8106_v11 = vsel %vm712_vm6, %v3125_v26, %v3126_v20  ;;  %v3131_v29 = vrot.slane %v7897_v58, 1  ;;  %v3140_v26 = vrot.slane %v7966_v5, 1  ;;  %v2870_v20 = vld [vmem:[%s8513_s3 + $0xa] sm:$0x3] }
 0x357   : > { %v8078_v62 = vsel %vm712_vm6, %v3113_v51, %v3114_v27  ;;  %v3128_v51 = vrot.slane %v7907_v48, 1 }
 0x358   : > { %v8120_v9 = vsel %vm712_vm6, %v3131_v29, %v3132_v63  ;;  %v8141_v37 = vsel %vm712_vm6, %v3140_v26, %v3141_v47 }
 0x359   : > { %v8115_v27 = vsel %vm712_vm6, %v3128_v51, %v3129_v30  ;;  %v4191_v30 = vsel %vm813_vm0, %v2870_v20, 0 }
 0x35b   : > { %6120 = vmatmul.mubr.msk.bf16.gmra.mrb[4].mxu1 %vm764_vm5, %v7754_v14 }
 0x35c   : > { %6123 = vmatprep.mubr.msk.bf16.mxu1 %vm764_vm5, %v7780_v18 }
 0x363   : > { %6124 = vmatmul.mubr.msk.bf16.gmra.mrb[8].mxu1 %vm764_vm5, %v7812_v35 }
 0x364   : > { %6127 = vmatprep.mubr.msk.bf16.mxu1 %vm764_vm5, %v7805_v44 }
 0x36b   : > { %6128 = vmatmul.mubr.msk.bf16.gmra.mrb[12].mxu1 %vm764_vm5, %v7835_v1 }
 0x36c   : > { %6131 = vmatprep.mubr.msk.bf16.mxu1 %vm764_vm5, %v7844_v34 }
 0x373   : > { %6132 = vmatmul.mubr.msk.bf16.gmra.mrb[16].mxu1 %vm764_vm5, %v7865_v3 }
 0x374   : > { %6135 = vmatprep.mubr.msk.bf16.mxu1 %vm764_vm5, %v7887_v54 }
 0x37b   : > { %6136 = vmatmul.mubr.msk.bf16.gmra.mrb[20].mxu1 %vm764_vm5, %v7907_v48 }
 0x37c   : > { %6139 = vmatprep.mubr.msk.bf16.mxu1 %vm764_vm5, %v7897_v58 }
 0x383   : > { %6140 = vmatmul.mubr.msk.bf16.gmra.mrb[24].mxu1 %vm764_vm5, %v7933_v55 }
 0x384   : > { %6143 = vmatprep.mubr.msk.bf16.mxu1 %vm764_vm5, %v7951_v36 }
 0x38b   : > { %6144 = vmatmul.mubr.msk.bf16.gmra.mrb[28].mxu1 %vm764_vm5, %v7966_v5 }
 0x38c   : > { %6149 = vmatprep.mubr.msk.bf16.mxu1 %vm764_vm5, %v7361_v41 }
 0x393   : > { %6150 = vmatmul.mubr.msk.bf16.vlgmr.msra.gmra.mrb[0].mxu1 %vm764_vm5, %v8041_v28 }
 0x394   : > { %6182 = vmatpush3.bf16.msra.mxu1 %v3793_v13  ;;  %6153 = vmatprep.mubr.msk.bf16.mxu1 %vm764_vm5, %v8049_v17  ;;  %v3119_v13 = vrot.slane %v7844_v34, 1 }
 0x395   : > { %6910 = vmatprep.subr.msk.bf16.mxu1 %vm813_vm0, %v2869_v16  ;;  %v2798_v16 = vshll.u32 %v7928_v7, 16 }
 0x396   : > { %v8092_v53 = vsel %vm712_vm6, %v3119_v13, %v3120_v56  ;;  %v3134_v13 = vrot.slane %v7933_v55, 1 }
 0x398   : > { %v8129_v56 = vsel %vm712_vm6, %v3134_v13, %v3135_v46 }
 0x39b   : > { %6154 = vmatmul.mubr.msk.bf16.gmra.mrb[4].mxu1 %vm764_vm5, %v8059_v52 }
 0x39c   : > { %6157 = vmatprep.mubr.msk.bf16.mxu1 %vm764_vm5, %v8064_v40 }
 0x3a3   : > { %6158 = vmatmul.mubr.msk.bf16.gmra.mrb[8].mxu1 %vm764_vm5, %v8073_v2 }
 0x3a4   : > { %6161 = vmatprep.mubr.msk.bf16.mxu1 %vm764_vm5, %v8078_v62 }
 0x3ab   : > { %6162 = vmatmul.mubr.msk.bf16.gmra.mrb[12].mxu1 %vm764_vm5, %v8087_v42 }
 0x3ac   : > { %6165 = vmatprep.mubr.msk.bf16.mxu1 %vm764_vm5, %v8092_v53 }
 0x3b3   : > { %6166 = vmatmul.mubr.msk.bf16.gmra.mrb[16].mxu1 %vm764_vm5, %v8101_v23 }
 0x3b4   : > { %6169 = vmatprep.mubr.msk.bf16.mxu1 %vm764_vm5, %v8106_v11 }
 0x3bb   : > { %6170 = vmatmul.mubr.msk.bf16.gmra.mrb[20].mxu1 %vm764_vm5, %v8115_v27 }
 0x3bc   : > { %6173 = vmatprep.mubr.msk.bf16.mxu1 %vm764_vm5, %v8120_v9 }
 0x3c3   : > { %6174 = vmatmul.mubr.msk.bf16.gmra.mrb[24].mxu1 %vm764_vm5, %v8129_v56 }
 0x3c4   : > { %6177 = vmatprep.mubr.msk.bf16.mxu1 %vm764_vm5, %v8134_v25 }
 0x3cb   : > { %6178 = vmatmul.mubr.msk.bf16.gmra.mrb[28].mxu1 %vm764_vm5, %v8141_v37 }
 0x3cc   : > { %6183 = vmatprep.mubr.msk.bf16.mxu1 %vm764_vm5, %v7736_v59  ;;  %v2795_v59 = vshrl.u32 %v7928_v7, 16  ;;  %v2871_v7 = vld [vmem:[%s8513_s3 + $0xc] sm:$0x3] }
 0x3cd   : > { %v4387_v4 = vsel %vm813_vm0, %v2871_v7, 0 }
 0x3ce   : > { %v2797_v24 = vrot.slane %v2795_v59, 7 }
 0x3d0   : > { %v2800_v51 = vor.u32 %v2798_v16, %v2797_v24  ;;  %v2864_v63 = vsel %vm7008_vm3, %v2797_v24, 0  ;;  %v2873_v16 = vld [vmem:[%s8513_s3 + $0x10] sm:$0x3] }
 0x3d1   : > { %v3062_v46 = vshll.u32 %v2864_v63, 16 }
 0x3d2   : > { %v8184_v29 = vsel %vm7008_vm3, 0, %v2800_v51 }
 0x3d3   : > { %6184 = vmatmul.mubr.msk.bf16.vlgmr.msra.gmra.mrb[0].mxu1 %vm764_vm5, %v7731_v0  ;;  %v3055_v60 = vshrl.u32 %v8184_v29, 16  ;;  %v3064_v26 = vrot.slane %v3062_v46, 1 }
 0x3d4   : > { %6216 = vmatpush3.bf16.msra.mxu1 %v3992_v8  ;;  %6187 = vmatprep.mubr.msk.bf16.mxu1 %vm764_vm5, %v7754_v14  ;;  %v2872_v8 = vld [vmem:[%s8513_s3 + $0xe] sm:$0x3] }
 0x3d5   : > { %6911 = vmatprep.subr.msk.bf16.mxu1 %vm813_vm0, %v2870_v20  ;;  %v3144_v20 = vrot.slane %v2864_v63, 1  ;;  %v4583_v24 = vsel %vm813_vm0, %v2872_v8, 0 }
 0x3db   : > { %6188 = vmatmul.mubr.msk.bf16.gmra.mrb[4].mxu1 %vm764_vm5, %v7780_v18 }
 0x3dc   : > { %6191 = vmatprep.mubr.msk.bf16.mxu1 %vm764_vm5, %v7812_v35 }
 0x3e3   : > { %6192 = vmatmul.mubr.msk.bf16.gmra.mrb[8].mxu1 %vm764_vm5, %v7805_v44 }
 0x3e4   : > { %6195 = vmatprep.mubr.msk.bf16.mxu1 %vm764_vm5, %v7835_v1 }
 0x3eb   : > { %6196 = vmatmul.mubr.msk.bf16.gmra.mrb[12].mxu1 %vm764_vm5, %v7844_v34 }
 0x3ec   : > { %6199 = vmatprep.mubr.msk.bf16.mxu1 %vm764_vm5, %v7865_v3 }
 0x3f3   : > { %6200 = vmatmul.mubr.msk.bf16.gmra.mrb[16].mxu1 %vm764_vm5, %v7887_v54 }
 0x3f4   : > { %6203 = vmatprep.mubr.msk.bf16.mxu1 %vm764_vm5, %v7907_v48 }
 0x3fb   : > { %6204 = vmatmul.mubr.msk.bf16.gmra.mrb[20].mxu1 %vm764_vm5, %v7897_v58 }
 0x3fc   : > { %6207 = vmatprep.mubr.msk.bf16.mxu1 %vm764_vm5, %v7933_v55 }
 0x403   : > { %6208 = vmatmul.mubr.msk.bf16.gmra.mrb[24].mxu1 %vm764_vm5, %v7951_v36 }
 0x404   : > { %6211 = vmatprep.mubr.msk.bf16.mxu1 %vm764_vm5, %v7966_v5 }
 0x40b   : > { %6212 = vmatmul.mubr.msk.bf16.gmra.mrb[28].mxu1 %vm764_vm5, %v8184_v29 }
 0x40c   : > { %6217 = vmatprep.mubr.msk.bf16.mxu1 %vm764_vm5, %v7757_v43  ;;  %v3057_v43 = vshll.u32 %v8184_v29, 16 }
 0x40e   : > { %v3059_v13 = vrot.slane %v3057_v43, 1 }
 0x410   : > { %v3060_v57 = vor.u32 %v3059_v13, %v3055_v60  ;;  %v6933_v13 = vld [vmem:[%s7035_s27 + $0x40] sm:$0xff] }
 0x412   : > { %v3065_v47 = vsel %vm473_vm4, %v3060_v57, %v3064_v26  ;;  %v6934_v26 = vld [vmem:[%s7035_s27 + $0x58] sm:$0xff] }
 0x413   : > { %6218 = vmatmul.mubr.msk.bf16.vlgmr.msra.gmra.mrb[0].mxu1 %vm764_vm5, %v7768_v50 }
 0x414   : > { %6250 = vmatpush3.bf16.msra.mxu1 %v4191_v30  ;;  %6221 = vmatprep.mubr.msk.bf16.mxu1 %vm764_vm5, %v7800_v12  ;;  %v6932_v30 = vld [vmem:[%s7035_s27 + $0x50] sm:$0xff] }
 0x415   : > { %6912 = vmatprep.subr.msk.bf16.mxu1 %vm813_vm0, %v2871_v7 }
 0x41b   : > { %6222 = vmatmul.mubr.msk.bf16.gmra.mrb[4].mxu1 %vm764_vm5, %v7818_v61 }
 0x41c   : > { %6225 = vmatprep.mubr.msk.bf16.mxu1 %vm764_vm5, %v7847_v22 }
 0x423   : > { %6226 = vmatmul.mubr.msk.bf16.gmra.mrb[8].mxu1 %vm764_vm5, %v7853_v19 }
 0x424   : > { %6229 = vmatprep.mubr.msk.bf16.mxu1 %vm764_vm5, %v7878_v33 }
 0x42b   : > { %6230 = vmatmul.mubr.msk.bf16.gmra.mrb[12].mxu1 %vm764_vm5, %v7890_v15 }
 0x42c   : > { %6233 = vmatprep.mubr.msk.bf16.mxu1 %vm764_vm5, %v7914_v10 }
 0x433   : > { %6234 = vmatmul.mubr.msk.bf16.gmra.mrb[16].mxu1 %vm764_vm5, %v7926_v39 }
 0x434   : > { %6237 = vmatprep.mubr.msk.bf16.mxu1 %vm764_vm5, %v7955_v31 }
 0x43b   : > { %6238 = vmatmul.mubr.msk.bf16.gmra.mrb[20].mxu1 %vm764_vm5, %v7961_v38 }
 0x43c   : > { %6241 = vmatprep.mubr.msk.bf16.mxu1 %vm764_vm5, %v7979_v49 }
 0x443   : > { %6242 = vmatmul.mubr.msk.bf16.gmra.mrb[24].mxu1 %vm764_vm5, %v7986_v45 }
 0x444   : > { %6245 = vmatprep.mubr.msk.bf16.mxu1 %vm764_vm5, %v7991_v32 }
 0x44b   : > { %6246 = vmatmul.mubr.msk.bf16.gmra.mrb[28].mxu1 %vm764_vm5, %v3065_v47 }
 0x44c   : > { %6251 = vmatprep.mubr.msk.bf16.mxu1 %vm764_vm5, %v8041_v28  ;;  %v3143_v28 = vrot.slane %v8184_v29, 1 }
 0x44e   : > { %v3145_v59 = vsel %vm712_vm6, %v3143_v28, %v3144_v20 }
 0x453   : > { %6252 = vmatmul.mubr.msk.bf16.vlgmr.msra.gmra.mrb[0].mxu1 %vm764_vm5, %v8049_v17 }
 0x454   : > { %6284 = vmatpush3.bf16.msra.mxu1 %v4387_v4  ;;  %6255 = vmatprep.mubr.msk.bf16.mxu1 %vm764_vm5, %v8059_v52 }
 0x455   : > { %6913 = vmatprep.subr.msk.bf16.mxu1 %vm813_vm0, %v2872_v8  ;;  %v6935_v8 = vld [vmem:[%s7035_s27 + $0x48] sm:$0xff] }
 0x45b   : > { %6256 = vmatmul.mubr.msk.bf16.gmra.mrb[4].mxu1 %vm764_vm5, %v8064_v40 }
 0x45c   : > { %6259 = vmatprep.mubr.msk.bf16.mxu1 %vm764_vm5, %v8073_v2 }
 0x463   : > { %6260 = vmatmul.mubr.msk.bf16.gmra.mrb[8].mxu1 %vm764_vm5, %v8078_v62 }
 0x464   : > { %6263 = vmatprep.mubr.msk.bf16.mxu1 %vm764_vm5, %v8087_v42 }
 0x46b   : > { %6264 = vmatmul.mubr.msk.bf16.gmra.mrb[12].mxu1 %vm764_vm5, %v8092_v53 }
 0x46c   : > { %6267 = vmatprep.mubr.msk.bf16.mxu1 %vm764_vm5, %v8101_v23 }
 0x473   : > { %6268 = vmatmul.mubr.msk.bf16.gmra.mrb[16].mxu1 %vm764_vm5, %v8106_v11 }
 0x474   : > { %6271 = vmatprep.mubr.msk.bf16.mxu1 %vm764_vm5, %v8115_v27 }
 0x47b   : > { %6272 = vmatmul.mubr.msk.bf16.gmra.mrb[20].mxu1 %vm764_vm5, %v8120_v9 }
 0x47c   : > { %6275 = vmatprep.mubr.msk.bf16.mxu1 %vm764_vm5, %v8129_v56 }
 0x483   : > { %6276 = vmatmul.mubr.msk.bf16.gmra.mrb[24].mxu1 %vm764_vm5, %v8134_v25 }
 0x484   : > { %6279 = vmatprep.mubr.msk.bf16.mxu1 %vm764_vm5, %v8141_v37 }
 0x48b   : > { %6280 = vmatmul.mubr.msk.bf16.gmra.mrb[28].mxu1 %vm764_vm5, %v3145_v59 }
 0x48c   : > { %6285 = vmatprep.mubr.msk.bf16.mxu1 %vm764_vm5, %v7731_v0  ;;  %v4779_v0 = vsel %vm813_vm0, %v2873_v16, 0 }
 0x493   : > { %6286 = vmatmul.mubr.msk.bf16.vlgmr.msra.gmra.mrb[0].mxu1 %vm764_vm5, %v7754_v14 }
 0x494   : > { %6318 = vmatpush3.bf16.msra.mxu1 %v4583_v24  ;;  %6289 = vmatprep.mubr.msk.bf16.mxu1 %vm764_vm5, %v7780_v18 }
 0x495   : > { %6914 = vmatprep.subr.msk.bf16.mxu1 %vm813_vm0, %v2873_v16 }
 0x49b   : > { %6290 = vmatmul.mubr.msk.bf16.gmra.mrb[4].mxu1 %vm764_vm5, %v7812_v35 }
 0x49c   : > { %6293 = vmatprep.mubr.msk.bf16.mxu1 %vm764_vm5, %v7805_v44  ;;  %v6924_v44 = vld [vmem:[%s7035_s27 + $0x10] sm:$0xff] }
 0x4a3   : > { %6294 = vmatmul.mubr.msk.bf16.gmra.mrb[8].mxu1 %vm764_vm5, %v7835_v1 }
 0x4a4   : > { %6297 = vmatprep.mubr.msk.bf16.mxu1 %vm764_vm5, %v7844_v34 }
 0x4ab   : > { %6298 = vmatmul.mubr.msk.bf16.gmra.mrb[12].mxu1 %vm764_vm5, %v7865_v3  ;;  %v6926_v3 = vld [vmem:[%s7035_s27 + $0x18] sm:$0xff] }
 0x4ac   : > { %6301 = vmatprep.mubr.msk.bf16.mxu1 %vm764_vm5, %v7887_v54 }
 0x4b3   : > { %6302 = vmatmul.mubr.msk.bf16.gmra.mrb[16].mxu1 %vm764_vm5, %v7907_v48 }
 0x4b4   : > { %6305 = vmatprep.mubr.msk.bf16.mxu1 %vm764_vm5, %v7897_v58 }
 0x4bb   : > { %6306 = vmatmul.mubr.msk.bf16.gmra.mrb[20].mxu1 %vm764_vm5, %v7933_v55 }
 0x4bc   : > { %6309 = vmatprep.mubr.msk.bf16.mxu1 %vm764_vm5, %v7951_v36 }
 0x4c3   : > { %6310 = vmatmul.mubr.msk.bf16.gmra.mrb[24].mxu1 %vm764_vm5, %v7966_v5  ;;  %v6928_v5 = vld [vmem:[%s7035_s27 + $0x30] sm:$0xff] }
 0x4c4   : > { %6313 = vmatprep.mubr.msk.bf16.mxu1 %vm764_vm5, %v8184_v29 }
 0x4cb   : > { %6314 = vmatmul.mubr.msk.bf16.gmra.mrb[28].mxu1 %vm764_vm5, %v7017_v6  ;;  %v8370_v6 = vld [vmem:[%s8514_s4] ss:$0 sm:$0xff] }
 0x4cc   : > { %6319 = vmatprep.mubr.msk.bf16.mxu1 %vm764_vm5, %v7768_v50 }
 0x4d3   : > { %6320 = vmatmul.mubr.msk.bf16.vlgmr.msra.gmra.mrb[0].mxu1 %vm764_vm5, %v7800_v12 }
 0x4d4   : > { %6352 = vmatpush3.bf16.msra.mxu1 %v4779_v0  ;;  %6323 = vmatprep.mubr.msk.bf16.mxu1 %vm764_vm5, %v7818_v61 }
 0x4db   : > { %6324 = vmatmul.mubr.msk.bf16.gmra.mrb[4].mxu1 %vm764_vm5, %v7847_v22 }
 0x4dc   : > { %6327 = vmatprep.mubr.msk.bf16.mxu1 %vm764_vm5, %v7853_v19 }
 0x4e3   : > { %6328 = vmatmul.mubr.msk.bf16.gmra.mrb[8].mxu1 %vm764_vm5, %v7878_v33 }
 0x4e4   : > { %6331 = vmatprep.mubr.msk.bf16.mxu1 %vm764_vm5, %v7890_v15  ;;  %v6927_v15 = vld [vmem:[%s7035_s27 + $0x8] sm:$0xff] }
 0x4eb   : > { %6332 = vmatmul.mubr.msk.bf16.gmra.mrb[12].mxu1 %vm764_vm5, %v7914_v10 }
 0x4ec   : > { %6335 = vmatprep.mubr.msk.bf16.mxu1 %vm764_vm5, %v7926_v39 }
 0x4f3   : > { %6336 = vmatmul.mubr.msk.bf16.gmra.mrb[16].mxu1 %vm764_vm5, %v7955_v31 }
 0x4f4   : > { %6339 = vmatprep.mubr.msk.bf16.mxu1 %vm764_vm5, %v7961_v38 }
 0x4fb   : > { %6340 = vmatmul.mubr.msk.bf16.gmra.mrb[20].mxu1 %vm764_vm5, %v7979_v49 }
 0x4fc   : > { %6343 = vmatprep.mubr.msk.bf16.mxu1 %vm764_vm5, %v7986_v45 }
 0x503   : > { %6344 = vmatmul.mubr.msk.bf16.gmra.mrb[24].mxu1 %vm764_vm5, %v7991_v32 }
 0x504   : > { %6347 = vmatprep.mubr.msk.bf16.mxu1 %vm764_vm5, %v3065_v47 }
 0x50b   : > { %6348 = vmatmul.mubr.msk.bf16.gmra.mrb[28].mxu1 %vm764_vm5, %v7044_v21 }
 0x50c   : > { %6353 = vmatprep.mubr.msk.bf16.mxu1 %vm764_vm5, %v8049_v17  ;;  %v6929_v17 = vld [vmem:[%s7035_s27 + $0x20] sm:$0xff] }
 0x513   : > { %6354 = vmatmul.mubr.msk.bf16.vlgmr.msra.gmra.mrb[0].mxu1 %vm764_vm5, %v8059_v52 }
 0x514   : > { %6357 = vmatprep.mubr.msk.bf16.mxu1 %vm764_vm5, %v8064_v40 }
 0x51b   : > { %6358 = vmatmul.mubr.msk.bf16.gmra.mrb[4].mxu1 %vm764_vm5, %v8073_v2 }
 0x51c   : > { %6361 = vmatprep.mubr.msk.bf16.mxu1 %vm764_vm5, %v8078_v62  ;;  %v6930_v62 = vld [vmem:[%s7035_s27 + $0x38] sm:$0xff] }
 0x523   : > { %6362 = vmatmul.mubr.msk.bf16.gmra.mrb[8].mxu1 %vm764_vm5, %v8087_v42 }
 0x524   : > { %6365 = vmatprep.mubr.msk.bf16.mxu1 %vm764_vm5, %v8092_v53 }
 0x52b   : > { %6366 = vmatmul.mubr.msk.bf16.gmra.mrb[12].mxu1 %vm764_vm5, %v8101_v23  ;;  %v6931_v23 = vld [vmem:[%s7035_s27 + $0x28] sm:$0xff] }
 0x52c   : > { %6369 = vmatprep.mubr.msk.bf16.mxu1 %vm764_vm5, %v8106_v11 }
 0x533   : > { %6370 = vmatmul.mubr.msk.bf16.gmra.mrb[16].mxu1 %vm764_vm5, %v8115_v27 }
 0x534   : > { %6373 = vmatprep.mubr.msk.bf16.mxu1 %vm764_vm5, %v8120_v9 }
 0x53b   : > { %6374 = vmatmul.mubr.msk.bf16.gmra.mrb[20].mxu1 %vm764_vm5, %v8129_v56 }
 0x53c   : > { %6377 = vmatprep.mubr.msk.bf16.mxu1 %vm764_vm5, %v8134_v25 }
 0x543   : > { %6378 = vmatmul.mubr.msk.bf16.gmra.mrb[24].mxu1 %vm764_vm5, %v8141_v37 }
 0x544   : > { %6381 = vmatprep.mubr.msk.bf16.mxu1 %vm764_vm5, %v3145_v59 }
 0x54b   : > { %6382 = vmatmul.mubr.msk.bf16.gmra.mrb[28].mxu1 %vm764_vm5, %v7361_v41  ;;  %v6925_v41 = vld [vmem:[%s7035_s27] sm:$0xff] }
 0x5e6   : > { %v6355_v21 = vpop.f32.mrb[0].mxu1 }
 0x5e7   : > { %v4983_v14 = vadd.f32 %v6355_v21, %v8370_v6  ;;  %v4815_v50 = vpop.f32.mrb[1].mxu1 }
 0x5e8   : > { %v4981_v18 = vadd.f32 %v8370_v6, %v4815_v50  ;;  %v6356_v12 = vpop.f32.mrb[2].mxu1  ;;  %v6936_v50 = vld [vmem:[%s7035_s27 + $0x70] sm:$0xff] }
 0x5e9   : > { %v5015_v35 = vadd.f32 %v6924_v44, %v4983_v14  ;;  %v4984_v61 = vadd.f32 %v6356_v12, %v8370_v6  ;;  %v4818_v1 = vpop.f32.mrb[3].mxu1 }
 0x5ea   : > { %v5013_v34 = vadd.f32 %v6925_v41, %v4981_v18  ;;  %v4982_v22 = vadd.f32 %v8370_v6, %v4818_v1 }
 0x5eb   : > { %v5047_v19 = vmax.f32 %v5015_v35, 0.0  ;;  %v5016_v33 = vadd.f32 %v6926_v3, %v4984_v61  ;;  %v6937_v35 = vld [vmem:[%s7035_s27 + $0x60] sm:$0xff]  ;;  %v6939_v3 = vld [vmem:[%s7035_s27 + $0x68] sm:$0xff] }
 0x5ec   : > { %v5045_v54 = vmax.f32 %v5013_v34, 0.0  ;;  %v5014_v58 = vadd.f32 %v6927_v15, %v4982_v22  ;;  %v6938_v34 = vld [vmem:[%s7035_s27 + $0x78] sm:$0xff] }
 0x5ed   : > { %5079 = vst.msk [vmem:[%s8381_s22 + $0x10] sm:$0xff] %vm764_vm5, %v5047_v19  ;;  %v5048_v48 = vmax.f32 %v5016_v33, 0.0 }
 0x5ee   : > { %5077 = vst.msk [vmem:[%s8381_s22] sm:$0xff] %vm764_vm5, %v5045_v54  ;;  %v5046_v10 = vmax.f32 %v5014_v58, 0.0  ;;  %v6359_v39 = vpop.f32.mrb[4].mxu1 }
 0x5ef   : > { %5080 = vst.msk [vmem:[%s8381_s22 + $0x18] sm:$0xff] %vm764_vm5, %v5048_v48  ;;  %v4987_v55 = vadd.f32 %v6359_v39, %v8370_v6  ;;  %v4831_v36 = vpop.f32.mrb[5].mxu1 }
 0x5f0   : > { %5078 = vst.msk [vmem:[%s8381_s22 + $0x8] sm:$0xff] %vm764_vm5, %v5046_v10  ;;  %v4985_v31 = vadd.f32 %v8370_v6, %v4831_v36  ;;  %v6360_v38 = vpop.f32.mrb[6].mxu1  ;;  %v6940_v36 = vld [vmem:[%s7035_s27 + $0x90] sm:$0xff] }
 0x5f1   : > { %v5019_v49 = vadd.f32 %v6928_v5, %v4987_v55  ;;  %v4988_v45 = vadd.f32 %v6360_v38, %v8370_v6  ;;  %v4834_v32 = vpop.f32.mrb[7].mxu1 }
 0x5f2   : > { %v5017_v52 = vadd.f32 %v6929_v17, %v4985_v31  ;;  %v4986_v40 = vadd.f32 %v8370_v6, %v4834_v32 }
 0x5f3   : > { %v5051_v2 = vmax.f32 %v5019_v49, 0.0  ;;  %v5020_v42 = vadd.f32 %v6930_v62, %v4988_v45  ;;  %v6941_v49 = vld [vmem:[%s7035_s27 + $0x80] sm:$0xff]  ;;  %v6943_v62 = vld [vmem:[%s7035_s27 + $0x88] sm:$0xff] }
 0x5f4   : > { %v5049_v53 = vmax.f32 %v5017_v52, 0.0  ;;  %v5018_v11 = vadd.f32 %v6931_v23, %v4986_v40  ;;  %v6942_v52 = vld [vmem:[%s7035_s27 + $0x98] sm:$0xff] }
 0x5f5   : > { %5083 = vst.msk [vmem:[%s8381_s22 + $0x30] sm:$0xff] %vm764_vm5, %v5051_v2  ;;  %v5052_v27 = vmax.f32 %v5020_v42, 0.0 }
 0x5f6   : > { %5081 = vst.msk [vmem:[%s8381_s22 + $0x20] sm:$0xff] %vm764_vm5, %v5049_v53  ;;  %v5050_v9 = vmax.f32 %v5018_v11, 0.0  ;;  %v6363_v56 = vpop.f32.mrb[8].mxu1 }
 0x5f7   : > { %5084 = vst.msk [vmem:[%s8381_s22 + $0x38] sm:$0xff] %vm764_vm5, %v5052_v27  ;;  %v4991_v25 = vadd.f32 %v6363_v56, %v8370_v6  ;;  %v4847_v37 = vpop.f32.mrb[9].mxu1 }
 0x5f8   : > { %5082 = vst.msk [vmem:[%s8381_s22 + $0x28] sm:$0xff] %vm764_vm5, %v5050_v9  ;;  %v4989_v51 = vadd.f32 %v8370_v6, %v4847_v37  ;;  %v6364_v29 = vpop.f32.mrb[10].mxu1  ;;  %v6944_v37 = vld [vmem:[%s7035_s27 + $0xb0] sm:$0xff] }
 0x5f9   : > { %v5023_v7 = vadd.f32 %v6932_v30, %v4991_v25  ;;  %v4992_v43 = vadd.f32 %v6364_v29, %v8370_v6  ;;  %v4850_v63 = vpop.f32.mrb[11].mxu1 }
 0x5fa   : > { %v5021_v60 = vadd.f32 %v6933_v13, %v4989_v51  ;;  %v4990_v46 = vadd.f32 %v8370_v6, %v4850_v63 }
 0x5fb   : > { %v5055_v57 = vmax.f32 %v5023_v7, 0.0  ;;  %v5024_v47 = vadd.f32 %v6934_v26, %v4992_v43  ;;  %v6945_v7 = vld [vmem:[%s7035_s27 + $0xa0] sm:$0xff]  ;;  %v6947_v26 = vld [vmem:[%s7035_s27 + $0xa8] sm:$0xff] }
 0x5fc   : > { %v5053_v4 = vmax.f32 %v5021_v60, 0.0  ;;  %v5022_v28 = vadd.f32 %v6935_v8, %v4990_v46  ;;  %v6946_v60 = vld [vmem:[%s7035_s27 + $0xb8] sm:$0xff] }
 0x5fd   : > { %5087 = vst.msk [vmem:[%s8381_s22 + $0x50] sm:$0xff] %vm764_vm5, %v5055_v57  ;;  %v5056_v20 = vmax.f32 %v5024_v47, 0.0 }
 0x5fe   : > { %5085 = vst.msk [vmem:[%s8381_s22 + $0x40] sm:$0xff] %vm764_vm5, %v5053_v4  ;;  %v5054_v59 = vmax.f32 %v5022_v28, 0.0  ;;  %v6367_v24 = vpop.f32.mrb[12].mxu1 }
 0x5ff   : > { %5088 = vst.msk [vmem:[%s8381_s22 + $0x58] sm:$0xff] %vm764_vm5, %v5056_v20  ;;  %v4995_v16 = vadd.f32 %v6367_v24, %v8370_v6  ;;  %v4863_v0 = vpop.f32.mrb[13].mxu1 }
 0x600   : > { %5086 = vst.msk [vmem:[%s8381_s22 + $0x48] sm:$0xff] %vm764_vm5, %v5054_v59  ;;  %v4993_v21 = vadd.f32 %v8370_v6, %v4863_v0  ;;  %v6368_v14 = vpop.f32.mrb[14].mxu1  ;;  %v6948_v0 = vld [vmem:[%s7035_s27 + $0xd0] sm:$0xff] }
 0x601   : > { %v5027_v18 = vadd.f32 %v6936_v50, %v4995_v16  ;;  %v4996_v12 = vadd.f32 %v6368_v14, %v8370_v6  ;;  %v4866_v44 = vpop.f32.mrb[15].mxu1 }
 0x602   : > { %v5025_v61 = vadd.f32 %v6937_v35, %v4993_v21  ;;  %v4994_v1 = vadd.f32 %v8370_v6, %v4866_v44 }
 0x603   : > { %v5059_v41 = vmax.f32 %v5027_v18, 0.0  ;;  %v5028_v22 = vadd.f32 %v6938_v34, %v4996_v12  ;;  %v6949_v18 = vld [vmem:[%s7035_s27 + $0xc0] sm:$0xff]  ;;  %v6951_v34 = vld [vmem:[%s7035_s27 + $0xc8] sm:$0xff] }
 0x604   : > { %v5057_v19 = vmax.f32 %v5025_v61, 0.0  ;;  %v5026_v33 = vadd.f32 %v6939_v3, %v4994_v1  ;;  %v6950_v61 = vld [vmem:[%s7035_s27 + $0xd8] sm:$0xff] }
 0x605   : > { %5091 = vst.msk [vmem:[%s8381_s22 + $0x70] sm:$0xff] %vm764_vm5, %v5059_v41  ;;  %v5060_v54 = vmax.f32 %v5028_v22, 0.0 }
 0x606   : > { %5089 = vst.msk [vmem:[%s8381_s22 + $0x60] sm:$0xff] %vm764_vm5, %v5057_v19  ;;  %v5058_v15 = vmax.f32 %v5026_v33, 0.0  ;;  %v6371_v58 = vpop.f32.mrb[16].mxu1 }
 0x607   : > { %5092 = vst.msk [vmem:[%s8381_s22 + $0x78] sm:$0xff] %vm764_vm5, %v5060_v54  ;;  %v4999_v48 = vadd.f32 %v6371_v58, %v8370_v6  ;;  %v4879_v10 = vpop.f32.mrb[17].mxu1 }
 0x608   : > { %5090 = vst.msk [vmem:[%s8381_s22 + $0x68] sm:$0xff] %vm764_vm5, %v5058_v15  ;;  %v4997_v39 = vadd.f32 %v8370_v6, %v4879_v10  ;;  %v6372_v55 = vpop.f32.mrb[18].mxu1  ;;  %v6952_v10 = vld [vmem:[%s7035_s27 + $0xf0] sm:$0xff] }
 0x609   : > { %v5031_v31 = vadd.f32 %v6940_v36, %v4999_v48  ;;  %v5000_v38 = vadd.f32 %v6372_v55, %v8370_v6  ;;  %v4882_v5 = vpop.f32.mrb[19].mxu1 }
 0x60a   : > { %v5029_v45 = vadd.f32 %v6941_v49, %v4997_v39  ;;  %v4998_v32 = vadd.f32 %v8370_v6, %v4882_v5 }
 0x60b   : > { %v5063_v17 = vmax.f32 %v5031_v31, 0.0  ;;  %v5032_v40 = vadd.f32 %v6942_v52, %v5000_v38  ;;  %v6953_v31 = vld [vmem:[%s7035_s27 + $0xe0] sm:$0xff]  ;;  %v6955_v52 = vld [vmem:[%s7035_s27 + $0xe8] sm:$0xff] }
 0x60c   : > { %v5061_v2 = vmax.f32 %v5029_v45, 0.0  ;;  %v5030_v42 = vadd.f32 %v6943_v62, %v4998_v32  ;;  %v6954_v45 = vld [vmem:[%s7035_s27 + $0xf8] sm:$0xff] }
 0x60d   : > { %5095 = vst.msk [vmem:[%s8381_s22 + $0x90] sm:$0xff] %vm764_vm5, %v5063_v17  ;;  %v5064_v53 = vmax.f32 %v5032_v40, 0.0 }
 0x60e   : > { %5093 = vst.msk [vmem:[%s8381_s22 + $0x80] sm:$0xff] %vm764_vm5, %v5061_v2  ;;  %v5062_v23 = vmax.f32 %v5030_v42, 0.0  ;;  %v6375_v11 = vpop.f32.mrb[20].mxu1 }
 0x60f   : > { %5096 = vst.msk [vmem:[%s8381_s22 + $0x98] sm:$0xff] %vm764_vm5, %v5064_v53  ;;  %v5003_v27 = vadd.f32 %v6375_v11, %v8370_v6  ;;  %v4895_v9 = vpop.f32.mrb[21].mxu1 }
 0x610   : > { %5094 = vst.msk [vmem:[%s8381_s22 + $0x88] sm:$0xff] %vm764_vm5, %v5062_v23  ;;  %v5001_v56 = vadd.f32 %v8370_v6, %v4895_v9  ;;  %v6376_v25 = vpop.f32.mrb[22].mxu1 }
 0x611   : > { %v5035_v51 = vadd.f32 %v6944_v37, %v5003_v27  ;;  %v5004_v29 = vadd.f32 %v6376_v25, %v8370_v6  ;;  %v4898_v30 = vpop.f32.mrb[23].mxu1 }
 0x612   : > { %v5033_v43 = vadd.f32 %v6945_v7, %v5001_v56  ;;  %v5002_v63 = vadd.f32 %v8370_v6, %v4898_v30 }
 0x613   : > { %v5067_v13 = vmax.f32 %v5035_v51, 0.0  ;;  %v5036_v46 = vadd.f32 %v6946_v60, %v5004_v29 }
 0x614   : > { %v5065_v57 = vmax.f32 %v5033_v43, 0.0  ;;  %v5034_v47 = vadd.f32 %v6947_v26, %v5002_v63 }
 0x615   : > { %5099 = vst.msk [vmem:[%s8381_s22 + $0xb0] sm:$0xff] %vm764_vm5, %v5067_v13  ;;  %v5068_v4 = vmax.f32 %v5036_v46, 0.0 }
 0x616   : > { %5097 = vst.msk [vmem:[%s8381_s22 + $0xa0] sm:$0xff] %vm764_vm5, %v5065_v57  ;;  %v5066_v8 = vmax.f32 %v5034_v47, 0.0  ;;  %v6379_v28 = vpop.f32.mrb[24].mxu1 }
 0x617   : > { %5100 = vst.msk [vmem:[%s8381_s22 + $0xb8] sm:$0xff] %vm764_vm5, %v5068_v4  ;;  %v5007_v20 = vadd.f32 %v6379_v28, %v8370_v6  ;;  %v4911_v59 = vpop.f32.mrb[25].mxu1 }
 0x618   : > { %5098 = vst.msk [vmem:[%s8381_s22 + $0xa8] sm:$0xff] %vm764_vm5, %v5066_v8  ;;  %v5005_v24 = vadd.f32 %v8370_v6, %v4911_v59  ;;  %v6380_v16 = vpop.f32.mrb[26].mxu1 }
 0x619   : > { %v5039_v21 = vadd.f32 %v6948_v0, %v5007_v20  ;;  %v5008_v14 = vadd.f32 %v6380_v16, %v8370_v6  ;;  %v4914_v50 = vpop.f32.mrb[27].mxu1 }
 0x61a   : > { %v5037_v12 = vadd.f32 %v6949_v18, %v5005_v24  ;;  %v5006_v44 = vadd.f32 %v8370_v6, %v4914_v50 }
 0x61b   : > { %v5071_v35 = vmax.f32 %v5039_v21, 0.0  ;;  %v5040_v1 = vadd.f32 %v6950_v61, %v5008_v14 }
 0x61c   : > { %v5069_v41 = vmax.f32 %v5037_v12, 0.0  ;;  %v5038_v22 = vadd.f32 %v6951_v34, %v5006_v44 }
 0x61d   : > { %5103 = vst.msk [vmem:[%s8381_s22 + $0xd0] sm:$0xff] %vm764_vm5, %v5071_v35  ;;  %v5072_v19 = vmax.f32 %v5040_v1, 0.0 }
 0x61e   : > { %5101 = vst.msk [vmem:[%s8381_s22 + $0xc0] sm:$0xff] %vm764_vm5, %v5069_v41  ;;  %v5070_v3 = vmax.f32 %v5038_v22, 0.0  ;;  %v6383_v33 = vpop.f32.mrb[28].mxu1 }
 0x61f   : > { %5104 = vst.msk [vmem:[%s8381_s22 + $0xd8] sm:$0xff] %vm764_vm5, %v5072_v19  ;;  %v5011_v54 = vadd.f32 %v6383_v33, %v8370_v6  ;;  %v4927_v15 = vpop.f32.mrb[29].mxu1 }
 0x620   : > { %5102 = vst.msk [vmem:[%s8381_s22 + $0xc8] sm:$0xff] %vm764_vm5, %v5070_v3  ;;  %v5009_v58 = vadd.f32 %v8370_v6, %v4927_v15  ;;  %v6384_v48 = vpop.f32.mrb[30].mxu1 }
 0x621   : > { %v5043_v39 = vadd.f32 %v6952_v10, %v5011_v54  ;;  %v5012_v55 = vadd.f32 %v6384_v48, %v8370_v6  ;;  %v4930_v36 = vpop.f32.mrb[31].mxu1 }
 0x622   : > { %v5041_v38 = vadd.f32 %v6953_v31, %v5009_v58  ;;  %v5010_v5 = vadd.f32 %v8370_v6, %v4930_v36 }
 0x623   : > { %v5075_v49 = vmax.f32 %v5043_v39, 0.0  ;;  %v5044_v32 = vadd.f32 %v6954_v45, %v5012_v55 }
 0x624   : > { %v5073_v17 = vmax.f32 %v5041_v38, 0.0  ;;  %v5042_v40 = vadd.f32 %v6955_v52, %v5010_v5 }
 0x625   : > { %5107 = vst.msk [vmem:[%s8381_s22 + $0xf0] sm:$0xff] %vm764_vm5, %v5075_v49  ;;  %v5076_v2 = vmax.f32 %v5044_v32, 0.0 }
 0x626   : > { %5105 = vst.msk [vmem:[%s8381_s22 + $0xe0] sm:$0xff] %vm764_vm5, %v5073_v17  ;;  %v5074_v62 = vmax.f32 %v5042_v40, 0.0 }
 0x627   : > { %5108 = vst.msk [vmem:[%s8381_s22 + $0xf8] sm:$0xff] %vm764_vm5, %v5076_v2 }
 0x628   : > { %5106 = vst.msk [vmem:[%s8381_s22 + $0xe8] sm:$0xff] %vm764_vm5, %v5074_v62 }
 0x629 PF: > { %s15_s18 = sadd.s32 1, %s6962_s18  }
 0x62a   : > { %p12_p4 = scmp.ge.s32.totalorder %s15_s18, 4  }
 0x62c   :  { %14 = sbr.rel (!%p12_p4) target bundleno = 1 (0x1), region = 70 }

</bundles_post_ra>
